<compile_context>
chip_gen: v7x
topology: tpu7x:2x2x1
jax: 0.10.0
libtpu: 0.0.40
codegen_flags: <defaults>
</compile_context>

<pallas_src>
import jax
import jax.numpy as jnp
from jax.experimental import pallas as pl
from jax.experimental.pallas import tpu as pltpu

# ------------------------- synthetic encoder config -------------------------
HIDDEN = 32
NUM_HEADS = 4
HEAD_DIM = HIDDEN // NUM_HEADS
INTERMEDIATE = 64
NUM_LAYERS = 2
VOCAB = 64
MAX_POS = 40
LN_EPS = 1e-5
NEG_BIG = -1e9
NSPLIT = 2  # leading "parallel" grid axis: 2 batch shards -> both v7x TensorCores; no-op on v5e/v6e

# packed-slab geometry
W_ROWS = HIDDEN + INTERMEDIATE                 # 96
W_COLS = 3 * HIDDEN + HIDDEN + INTERMEDIATE    # 192
B_ROWS = 8
B_COLS = 3 * HIDDEN                            # 96


def _layer_norm(x, gamma, beta):
    mu = jnp.mean(x, axis=-1, keepdims=True)
    var = jnp.mean((x - mu) ** 2, axis=-1, keepdims=True)
    return (x - mu) * jax.lax.rsqrt(var + LN_EPS) * gamma + beta


# ------------------------- fused encoder kernel -------------------------
def fused_encoder_kernel(nodes_ref, tokens_ref, attn_ref, emb_ref, pe_ref, embln_ref,
                         w_ref, b_ref, out_ref):
    layer = pl.program_id(1)
    B2, L, H = out_ref.shape
    I = INTERMEDIATE

    attn = attn_ref[...]                               # (B2, L, L) {0,1}

    # ---- layer 0 only: graph-guided node/token blend + embedding LayerNorm ----
    @pl.when(layer == 0)
    def _():
        nodes = nodes_ref[...]                         # (B2, L, 1) float {0,1}
        tokens = tokens_ref[...]                       # (B2, 1, L) float {0,1}
        emb = emb_ref[...]                             # (B2, L, H)
        m = nodes * tokens * attn                      # nodes_to_token_mask
        denom = jnp.sum(m, axis=-1, keepdims=True) + 1e-10
        norm = m * pl.reciprocal(denom, approx=True)
        avg = jnp.einsum('blm,bmh->blh', norm, emb,
                         preferred_element_type=jnp.float32)
        blended = emb * (1.0 - nodes) + avg * nodes
        embln = embln_ref[...]                         # (2, H): [gamma; beta]
        out_ref[...] = _layer_norm(blended + pe_ref[...], embln[0:1, :], embln[1:2, :])

    # ---- one RoBERTa encoder layer over the whole batch shard ----
    W = w_ref[0]                                       # (96, 192) packed weights
    Bv = b_ref[0]                                      # (8, 96)   packed biases / LN params
    wqkv = W[0:H, 0:3 * H]
    wo = W[0:H, 3 * H:4 * H]
    wi = W[0:H, 4 * H:4 * H + I]
    wo2 = W[H:H + I, 0:H]
    bqkv = Bv[0:1, 0:3 * H]
    bo = Bv[1:2, 0:H]
    g1 = Bv[2:3, 0:H]
    b1 = Bv[3:4, 0:H]
    bi = Bv[4:5, 0:I]
    bo2 = Bv[5:6, 0:H]
    g2 = Bv[6:7, 0:H]
    b2 = Bv[7:8, 0:H]

    x3 = out_ref[...]                                  # (B2, L, H) resident across layers
    x2 = x3.reshape(B2 * L, H)

    qkv = jnp.dot(x2, wqkv, preferred_element_type=jnp.float32) + bqkv   # (B2*L, 3H)
    qkv3 = qkv.reshape(B2, L, 3 * H)
    scale = 1.0 / (HEAD_DIM ** 0.5)
    q = qkv3[:, :, 0:H] * scale                        # fold scale into q once
    k = qkv3[:, :, H:2 * H]
    v = qkv3[:, :, 2 * H:3 * H]

    bias = (1.0 - attn) * NEG_BIG                      # HF-style extended attention mask
    heads = []
    for h in range(NUM_HEADS):                         # static head loop, batched over B2
        lo = h * HEAD_DIM
        qh = q[:, :, lo:lo + HEAD_DIM]
        kh = k[:, :, lo:lo + HEAD_DIM]
        vh = v[:, :, lo:lo + HEAD_DIM]
        s = jnp.einsum('bld,bmd->blm', qh, kh,
                       preferred_element_type=jnp.float32) + bias
        smax = jnp.max(s, axis=-1, keepdims=True)
        p = jnp.exp(s - smax)
        p = p * pl.reciprocal(jnp.sum(p, axis=-1, keepdims=True), approx=True)
        heads.append(jnp.einsum('blm,bmd->bld', p, vh,
                                preferred_element_type=jnp.float32))
    ctx = jnp.concatenate(heads, axis=-1).reshape(B2 * L, H)

    attn_out = jnp.dot(ctx, wo, preferred_element_type=jnp.float32) + bo
    x1 = _layer_norm(x2 + attn_out, g1, b1)

    # TODO(synk): HF RoBERTa uses exact (erf) GELU; tanh approximation used here.
    h1 = jnp.dot(x1, wi, preferred_element_type=jnp.float32) + bi
    h1 = jax.nn.gelu(h1, approximate=True)
    ffn = jnp.dot(h1, wo2, preferred_element_type=jnp.float32) + bo2
    out_ref[...] = _layer_norm(x1 + ffn, g2, b2).reshape(B2, L, H)


def fused_encoder(nodes_f, tokens_f, attn, emb, pe, embln, wslab, bslab):
    B, L, H = emb.shape
    assert B % NSPLIT == 0, "batch (2*bs) must be divisible by NSPLIT"
    B2 = B // NSPLIT

    def batch_spec(shape):
        return pl.BlockSpec(shape, lambda i, l: (i, 0, 0))

    return pl.pallas_call(
        fused_encoder_kernel,
        out_shape=jax.ShapeDtypeStruct((B, L, H), jnp.float32),
        grid=(NSPLIT, NUM_LAYERS),
        in_specs=[
            batch_spec((B2, L, 1)),                                   # nodes mask
            batch_spec((B2, 1, L)),                                   # tokens mask
            batch_spec((B2, L, L)),                                   # attn mask
            batch_spec((B2, L, H)),                                   # word embeddings
            batch_spec((B2, L, H)),                                   # position+type embeddings
            pl.BlockSpec((2, H), lambda i, l: (0, 0)),                # emb LN gamma/beta
            pl.BlockSpec((1, W_ROWS, W_COLS), lambda i, l: (l, 0, 0)),  # per-layer weight slab
            pl.BlockSpec((1, B_ROWS, B_COLS), lambda i, l: (l, 0, 0)),  # per-layer bias slab
        ],
        out_specs=pl.BlockSpec((B2, L, H), lambda i, l: (i, 0, 0)),   # resident across layers
        compiler_params=pltpu.CompilerParams(
            dimension_semantics=("parallel", "arbitrary")),
    )(nodes_f, tokens_f, attn, emb, pe, embln, wslab, bslab)


# ------------------------- parameter init (deterministic, synthetic) -------------------------
def init_params(key):
    def nrm(k, shape):
        return (0.02 * jax.random.normal(k, shape)).astype(jnp.float32)

    keys = jax.random.split(key, 3 + NUM_LAYERS)
    params = {
        "word_emb": nrm(keys[0], (VOCAB, HIDDEN)).at[1].set(0.0),  # padding_idx=1
        "pos_emb": nrm(keys[1], (MAX_POS, HIDDEN)),
        "type_emb": nrm(keys[2], (1, HIDDEN)),
        "emb_ln_g": jnp.ones((HIDDEN,), jnp.float32),
        "emb_ln_b": jnp.zeros((HIDDEN,), jnp.float32),
        "layers": [],
    }
    for li in range(NUM_LAYERS):
        lk = jax.random.split(keys[3 + li], 6)
        params["layers"].append({
            "wq": nrm(lk[0], (HIDDEN, HIDDEN)), "bq": jnp.zeros((HIDDEN,), jnp.float32),
            "wk": nrm(lk[1], (HIDDEN, HIDDEN)), "bk": jnp.zeros((HIDDEN,), jnp.float32),
            "wv": nrm(lk[2], (HIDDEN, HIDDEN)), "bv": jnp.zeros((HIDDEN,), jnp.float32),
            "wo": nrm(lk[3], (HIDDEN, HIDDEN)), "bo": jnp.zeros((HIDDEN,), jnp.float32),
            "g1": jnp.ones((HIDDEN,), jnp.float32), "b1": jnp.zeros((HIDDEN,), jnp.float32),
            "wi": nrm(lk[4], (HIDDEN, INTERMEDIATE)), "bi": jnp.zeros((INTERMEDIATE,), jnp.float32),
            "wo2": nrm(lk[5], (INTERMEDIATE, HIDDEN)), "bo2": jnp.zeros((HIDDEN,), jnp.float32),
            "g2": jnp.ones((HIDDEN,), jnp.float32), "b2": jnp.zeros((HIDDEN,), jnp.float32),
        })
    return params


def pack_params(params):
    """Pack per-layer weights/biases into two slabs (once, outside the hot path)."""
    H, I = HIDDEN, INTERMEDIATE
    wslabs, bslabs = [], []
    for lp in params["layers"]:
        w = jnp.zeros((W_ROWS, W_COLS), jnp.float32)
        w = w.at[0:H, 0:3 * H].set(jnp.concatenate([lp["wq"], lp["wk"], lp["wv"]], axis=1))
        w = w.at[0:H, 3 * H:4 * H].set(lp["wo"])
        w = w.at[0:H, 4 * H:4 * H + I].set(lp["wi"])
        w = w.at[H:H + I, 0:H].set(lp["wo2"])
        wslabs.append(w)

        def pad(v):
            return jnp.pad(v, (0, B_COLS - v.shape[0]))

        b = jnp.stack([
            jnp.concatenate([lp["bq"], lp["bk"], lp["bv"]]),
            pad(lp["bo"]), pad(lp["g1"]), pad(lp["b1"]),
            pad(lp["bi"]), pad(lp["bo2"]), pad(lp["g2"]), pad(lp["b2"]),
        ], axis=0)
        bslabs.append(b)

    return {
        "word_emb": params["word_emb"],
        "pos_emb": params["pos_emb"],
        "type_emb": params["type_emb"],
        "embln": jnp.stack([params["emb_ln_g"], params["emb_ln_b"]], axis=0),  # (2, H)
        "wslab": jnp.stack(wslabs, axis=0),   # (NUM_LAYERS, 96, 192)
        "bslab": jnp.stack(bslabs, axis=0),   # (NUM_LAYERS, 8, 96)
    }


# ------------------------- Model_sub.forward -------------------------
def model_sub_forward(packed, ids1, pos1, mask1, ids2, pos2, mask2):
    bs, l = ids1.shape
    ids = jnp.concatenate([ids1[:, None, :], ids2[:, None, :]], axis=1).reshape(bs * 2, l)
    pos = jnp.concatenate([pos1[:, None, :], pos2[:, None, :]], axis=1).reshape(bs * 2, l)
    attn = jnp.concatenate([mask1[:, None], mask2[:, None]], axis=1).reshape(bs * 2, l, l)
    attn = attn.astype(jnp.float32)

    # JAX glue: embedding-table gathers + tiny elementwise mask builds
    word_emb = jnp.take(packed["word_emb"], ids, axis=0)                     # (2bs, L, H)
    pe = jnp.take(packed["pos_emb"], pos, axis=0) + packed["type_emb"][0]    # (2bs, L, H)
    nodes_f = (pos == 0).astype(jnp.float32)[:, :, None]                     # (2bs, L, 1)
    tokens_f = (pos >= 2).astype(jnp.float32)[:, None, :]                    # (2bs, 1, L)

    # Single fused Pallas kernel: graph blend + embed LN + all encoder layers
    return fused_encoder(nodes_f, tokens_f, attn, word_emb, pe,
                         packed["embln"], packed["wslab"], packed["bslab"])  # outputs[0]


if __name__ == "__main__":
    bs, L = 2, 16
    key = jax.random.PRNGKey(0)
    kp, k1, k2, k3, k4 = jax.random.split(key, 5)

    params = init_params(kp)
    packed = pack_params(params)

    ids1 = jax.random.randint(k1, (bs, L), 2, VOCAB, dtype=jnp.int32)
    ids2 = jax.random.randint(k2, (bs, L), 2, VOCAB, dtype=jnp.int32)

    # positions: first 10 are code tokens (>=2), next 4 are DFG nodes (0), last 2 padding (1)
    base = jnp.concatenate([jnp.arange(2, 12, dtype=jnp.int32),
                            jnp.zeros((4,), jnp.int32),
                            jnp.ones((2,), jnp.int32)])
    pos1 = jnp.tile(base[None, :], (bs, 1))
    pos2 = jnp.tile(base[None, :], (bs, 1))

    eye = jnp.eye(L, dtype=jnp.float32)[None]
    m1 = jax.random.bernoulli(k3, 0.6, (bs, L, L)).astype(jnp.float32)
    m2 = jax.random.bernoulli(k4, 0.6, (bs, L, L)).astype(jnp.float32)
    mask1 = jnp.clip(m1 + eye, 0.0, 1.0)
    mask2 = jnp.clip(m2 + eye, 0.0, 1.0)

    fwd = jax.jit(model_sub_forward)
    out = fwd(packed, ids1, pos1, mask1, ids2, pos2, mask2)
    jax.block_until_ready(out)
    assert out.shape == (2 * bs, L, HIDDEN)
    print("KERNEL_OK")
</pallas_src>

<mosaic_0001>
module attributes {stable_mosaic.version = 11 : i64} {
  func.func @fused_encoder_kernel(%arg0: i32, %arg1: i32, %arg2: memref<2x16x1xf32, #tpu.memory_space<vmem>>, %arg3: memref<2x1x16xf32, #tpu.memory_space<vmem>>, %arg4: memref<2x16x16xf32, #tpu.memory_space<vmem>>, %arg5: memref<2x16x32xf32, #tpu.memory_space<vmem>>, %arg6: memref<2x16x32xf32, #tpu.memory_space<vmem>>, %arg7: memref<2x32xf32, #tpu.memory_space<vmem>>, %arg8: memref<1x96x192xf32, #tpu.memory_space<vmem>>, %arg9: memref<1x8x96xf32, #tpu.memory_space<vmem>>, %arg10: memref<2x16x32xf32, #tpu.memory_space<vmem>>) attributes {dimension_semantics = [#tpu.dimension_semantics<parallel>, #tpu.dimension_semantics<arbitrary>], iteration_bounds = array<i64: 2, 2>, scalar_prefetch = 0 : i64, scratch_operands = 0 : i64, tpu.core_type = #tpu.core_type<tc>, window_params = [{transform_indices = @transform_0, window_bounds = array<i64: 2, 16, 1>}, {transform_indices = @transform_1, window_bounds = array<i64: 2, 1, 16>}, {transform_indices = @transform_2, window_bounds = array<i64: 2, 16, 16>}, {transform_indices = @transform_3, window_bounds = array<i64: 2, 16, 32>}, {transform_indices = @transform_4, window_bounds = array<i64: 2, 16, 32>}, {pipeline_mode = #tpu.pipeline_mode<synchronous>, transform_indices = @transform_5, window_bounds = array<i64: 2, 32>}, {transform_indices = @transform_6, window_bounds = array<i64: 1, 96, 192>}, {transform_indices = @transform_7, window_bounds = array<i64: 1, 8, 96>}, {transform_indices = @transform_8, window_bounds = array<i64: 2, 16, 32>}]} {
    %c0 = arith.constant 0 : index
    %c0_0 = arith.constant 0 : index
    %c0_1 = arith.constant 0 : index
    %0 = vector.load %arg4[%c0, %c0_0, %c0_1] : memref<2x16x16xf32, #tpu.memory_space<vmem>>, vector<2x16x16xf32>
    %c0_i32 = arith.constant 0 : i32
    %1 = arith.cmpi eq, %arg1, %c0_i32 : i32
    %2 = arith.extui %1 : i1 to i32
    %c0_i32_2 = arith.constant 0 : i32
    %3 = arith.cmpi ne, %2, %c0_i32_2 : i32
    scf.if %3 {
      %c0_51 = arith.constant 0 : index
      %c0_52 = arith.constant 0 : index
      %c0_53 = arith.constant 0 : index
      %171 = vector.load %arg2[%c0_51, %c0_52, %c0_53] : memref<2x16x1xf32, #tpu.memory_space<vmem>>, vector<2x16x1xf32>
      %c0_54 = arith.constant 0 : index
      %c0_55 = arith.constant 0 : index
      %c0_56 = arith.constant 0 : index
      %172 = vector.load %arg3[%c0_54, %c0_55, %c0_56] : memref<2x1x16xf32, #tpu.memory_space<vmem>>, vector<2x1x16xf32>
      %c0_57 = arith.constant 0 : index
      %c0_58 = arith.constant 0 : index
      %c0_59 = arith.constant 0 : index
      %173 = vector.load %arg5[%c0_57, %c0_58, %c0_59] : memref<2x16x32xf32, #tpu.memory_space<vmem>>, vector<2x16x32xf32>
      %174 = vector.broadcast %171 : vector<2x16x1xf32> to vector<2x16x16xf32>
      %175 = vector.broadcast %172 : vector<2x1x16xf32> to vector<2x16x16xf32>
      %176 = arith.mulf %174, %175 : vector<2x16x16xf32>
      %177 = arith.mulf %176, %0 : vector<2x16x16xf32>
      %cst_60 = arith.constant dense<0.000000e+00> : vector<2x16xf32>
      %178 = vector.multi_reduction <add>, %177, %cst_60 [2] : vector<2x16x16xf32> to vector<2x16xf32>
      %179 = vector.shape_cast %178 : vector<2x16xf32> to vector<2x16x1xf32>
      %cst_61 = arith.constant 1.000000e-10 : f32
      %180 = vector.broadcast %cst_61 : f32 to vector<2x16x1xf32>
      %181 = arith.addf %179, %180 : vector<2x16x1xf32>
      %182 = tpu.reciprocal %181 {approx = true} : vector<2x16x1xf32> -> vector<2x16x1xf32>
      %183 = vector.broadcast %182 : vector<2x16x1xf32> to vector<2x16x16xf32>
      %184 = arith.mulf %177, %183 : vector<2x16x16xf32>
      "tpu.trace_start"() <{level = 10 : i32, message = "blm,bmh->blh"}> : () -> ()
      %cst_62 = arith.constant dense<0.000000e+00> : vector<2x16x32xf32>
      %185 = tpu.matmul %184, %173, %cst_62 {dimension_numbers = #tpu.dot_dimension_numbers<[2], [1], [1], [2], [0, 0, 0, 1, 1, 2], [0], [0]>} : vector<2x16x16xf32>, vector<2x16x32xf32>, vector<2x16x32xf32> -> vector<2x16x32xf32>
      "tpu.trace_stop"() : () -> ()
      %cst_63 = arith.constant 1.000000e+00 : f32
      %186 = vector.broadcast %cst_63 : f32 to vector<2x16x1xf32>
      %187 = arith.subf %186, %171 : vector<2x16x1xf32>
      %188 = vector.broadcast %187 : vector<2x16x1xf32> to vector<2x16x32xf32>
      %189 = arith.mulf %173, %188 : vector<2x16x32xf32>
      %190 = vector.broadcast %171 : vector<2x16x1xf32> to vector<2x16x32xf32>
      %191 = arith.mulf %185, %190 : vector<2x16x32xf32>
      %192 = arith.addf %189, %191 : vector<2x16x32xf32>
      %c0_64 = arith.constant 0 : index
      %c0_65 = arith.constant 0 : index
      %193 = vector.load %arg7[%c0_64, %c0_65] : memref<2x32xf32, #tpu.memory_space<vmem>>, vector<2x32xf32>
      %c0_66 = arith.constant 0 : index
      %c0_67 = arith.constant 0 : index
      %c0_68 = arith.constant 0 : index
      %194 = vector.load %arg6[%c0_66, %c0_67, %c0_68] : memref<2x16x32xf32, #tpu.memory_space<vmem>>, vector<2x16x32xf32>
      %195 = arith.addf %192, %194 : vector<2x16x32xf32>
      %196 = vector.extract_strided_slice %193 {offsets = [0, 0], sizes = [1, 32], strides = [1, 1]} : vector<2x32xf32> to vector<1x32xf32>
      %197 = vector.extract_strided_slice %193 {offsets = [1, 0], sizes = [1, 32], strides = [1, 1]} : vector<2x32xf32> to vector<1x32xf32>
      %cst_69 = arith.constant dense<0.000000e+00> : vector<2x16xf32>
      %198 = vector.multi_reduction <add>, %195, %cst_69 [2] : vector<2x16x32xf32> to vector<2x16xf32>
      %199 = vector.shape_cast %198 : vector<2x16xf32> to vector<2x16x1xf32>
      %cst_70 = arith.constant 3.200000e+01 : f32
      %200 = vector.broadcast %cst_70 : f32 to vector<2x16x1xf32>
      %201 = arith.divf %199, %200 : vector<2x16x1xf32>
      %202 = vector.broadcast %201 : vector<2x16x1xf32> to vector<2x16x32xf32>
      %203 = arith.subf %195, %202 : vector<2x16x32xf32>
      %204 = arith.mulf %203, %203 : vector<2x16x32xf32>
      %cst_71 = arith.constant dense<0.000000e+00> : vector<2x16xf32>
      %205 = vector.multi_reduction <add>, %204, %cst_71 [2] : vector<2x16x32xf32> to vector<2x16xf32>
      %206 = vector.shape_cast %205 : vector<2x16xf32> to vector<2x16x1xf32>
      %cst_72 = arith.constant 3.200000e+01 : f32
      %207 = vector.broadcast %cst_72 : f32 to vector<2x16x1xf32>
      %208 = arith.divf %206, %207 : vector<2x16x1xf32>
      %209 = vector.broadcast %201 : vector<2x16x1xf32> to vector<2x16x32xf32>
      %210 = arith.subf %195, %209 : vector<2x16x32xf32>
      %cst_73 = arith.constant 9.99999974E-6 : f32
      %211 = vector.broadcast %cst_73 : f32 to vector<2x16x1xf32>
      %212 = arith.addf %208, %211 : vector<2x16x1xf32>
      %213 = math.rsqrt %212 : vector<2x16x1xf32>
      %214 = vector.broadcast %213 : vector<2x16x1xf32> to vector<2x16x32xf32>
      %215 = arith.mulf %210, %214 : vector<2x16x32xf32>
      %216 = vector.shape_cast %196 : vector<1x32xf32> to vector<1x1x32xf32>
      %217 = vector.broadcast %216 : vector<1x1x32xf32> to vector<2x16x32xf32>
      %218 = arith.mulf %215, %217 : vector<2x16x32xf32>
      %219 = vector.shape_cast %197 : vector<1x32xf32> to vector<1x1x32xf32>
      %220 = vector.broadcast %219 : vector<1x1x32xf32> to vector<2x16x32xf32>
      %221 = arith.addf %218, %220 : vector<2x16x32xf32>
      %c0_74 = arith.constant 0 : index
      %c0_75 = arith.constant 0 : index
      %c0_76 = arith.constant 0 : index
      %222 = vector.load %arg10[%c0_74, %c0_75, %c0_76] : memref<2x16x32xf32, #tpu.memory_space<vmem>>, vector<2x16x32xf32>
      tpu.vector_store %arg10[%c0_74, %c0_75, %c0_76], %221 {strides = array<i32>} : memref<2x16x32xf32, #tpu.memory_space<vmem>>, vector<2x16x32xf32>,
    } else {
    }
    %c0_3 = arith.constant 0 : index
    %c0_4 = arith.constant 0 : index
    %c0_5 = arith.constant 0 : index
    %4 = vector.load %arg8[%c0_3, %c0_4, %c0_5] : memref<1x96x192xf32, #tpu.memory_space<vmem>>, vector<1x96x192xf32>
    %5 = vector.shape_cast %4 : vector<1x96x192xf32> to vector<96x192xf32>
    %c0_6 = arith.constant 0 : index
    %c0_7 = arith.constant 0 : index
    %c0_8 = arith.constant 0 : index
    %6 = vector.load %arg9[%c0_6, %c0_7, %c0_8] : memref<1x8x96xf32, #tpu.memory_space<vmem>>, vector<1x8x96xf32>
    %7 = vector.shape_cast %6 : vector<1x8x96xf32> to vector<8x96xf32>
    %8 = vector.extract_strided_slice %5 {offsets = [0, 0], sizes = [32, 96], strides = [1, 1]} : vector<96x192xf32> to vector<32x96xf32>
    %9 = vector.extract_strided_slice %5 {offsets = [0, 96], sizes = [32, 32], strides = [1, 1]} : vector<96x192xf32> to vector<32x32xf32>
    %10 = vector.extract_strided_slice %5 {offsets = [0, 128], sizes = [32, 64], strides = [1, 1]} : vector<96x192xf32> to vector<32x64xf32>
    %11 = vector.extract_strided_slice %5 {offsets = [32, 0], sizes = [64, 32], strides = [1, 1]} : vector<96x192xf32> to vector<64x32xf32>
    %12 = vector.extract_strided_slice %7 {offsets = [0, 0], sizes = [1, 96], strides = [1, 1]} : vector<8x96xf32> to vector<1x96xf32>
    %13 = vector.extract_strided_slice %7 {offsets = [1, 0], sizes = [1, 32], strides = [1, 1]} : vector<8x96xf32> to vector<1x32xf32>
    %14 = vector.extract_strided_slice %7 {offsets = [2, 0], sizes = [1, 32], strides = [1, 1]} : vector<8x96xf32> to vector<1x32xf32>
    %15 = vector.extract_strided_slice %7 {offsets = [3, 0], sizes = [1, 32], strides = [1, 1]} : vector<8x96xf32> to vector<1x32xf32>
    %16 = vector.extract_strided_slice %7 {offsets = [4, 0], sizes = [1, 64], strides = [1, 1]} : vector<8x96xf32> to vector<1x64xf32>
    %17 = vector.extract_strided_slice %7 {offsets = [5, 0], sizes = [1, 32], strides = [1, 1]} : vector<8x96xf32> to vector<1x32xf32>
    %18 = vector.extract_strided_slice %7 {offsets = [6, 0], sizes = [1, 32], strides = [1, 1]} : vector<8x96xf32> to vector<1x32xf32>
    %19 = vector.extract_strided_slice %7 {offsets = [7, 0], sizes = [1, 32], strides = [1, 1]} : vector<8x96xf32> to vector<1x32xf32>
    %c0_9 = arith.constant 0 : index
    %c0_10 = arith.constant 0 : index
    %c0_11 = arith.constant 0 : index
    %20 = vector.load %arg10[%c0_9, %c0_10, %c0_11] : memref<2x16x32xf32, #tpu.memory_space<vmem>>, vector<2x16x32xf32>
    %21 = vector.shape_cast %20 : vector<2x16x32xf32> to vector<32x32xf32>
    %cst = arith.constant dense<0.000000e+00> : vector<32x96xf32>
    %22 = tpu.matmul %21, %8, %cst {dimension_numbers = #tpu.dot_dimension_numbers<[1], [0], [0], [1], [0, 0, 1, 1], [], []>} : vector<32x32xf32>, vector<32x96xf32>, vector<32x96xf32> -> vector<32x96xf32>
    %23 = vector.broadcast %12 : vector<1x96xf32> to vector<32x96xf32>
    %24 = arith.addf %22, %23 : vector<32x96xf32>
    %25 = vector.shape_cast %24 : vector<32x96xf32> to vector<2x16x96xf32>
    %26 = vector.extract_strided_slice %25 {offsets = [0, 0, 0], sizes = [2, 16, 32], strides = [1, 1, 1]} : vector<2x16x96xf32> to vector<2x16x32xf32>
    %cst_12 = arith.constant 0.353553385 : f32
    %27 = vector.broadcast %cst_12 : f32 to vector<2x16x32xf32>
    %28 = arith.mulf %26, %27 : vector<2x16x32xf32>
    %29 = vector.extract_strided_slice %25 {offsets = [0, 0, 32], sizes = [2, 16, 32], strides = [1, 1, 1]} : vector<2x16x96xf32> to vector<2x16x32xf32>
    %30 = vector.extract_strided_slice %25 {offsets = [0, 0, 64], sizes = [2, 16, 32], strides = [1, 1, 1]} : vector<2x16x96xf32> to vector<2x16x32xf32>
    %cst_13 = arith.constant 1.000000e+00 : f32
    %31 = vector.broadcast %cst_13 : f32 to vector<2x16x16xf32>
    %32 = arith.subf %31, %0 : vector<2x16x16xf32>
    %cst_14 = arith.constant -1.000000e+09 : f32
    %33 = vector.broadcast %cst_14 : f32 to vector<2x16x16xf32>
    %34 = arith.mulf %32, %33 : vector<2x16x16xf32>
    %35 = vector.extract_strided_slice %28 {offsets = [0, 0, 0], sizes = [2, 16, 8], strides = [1, 1, 1]} : vector<2x16x32xf32> to vector<2x16x8xf32>
    %36 = vector.extract_strided_slice %29 {offsets = [0, 0, 0], sizes = [2, 16, 8], strides = [1, 1, 1]} : vector<2x16x32xf32> to vector<2x16x8xf32>
    %37 = vector.extract_strided_slice %30 {offsets = [0, 0, 0], sizes = [2, 16, 8], strides = [1, 1, 1]} : vector<2x16x32xf32> to vector<2x16x8xf32>
    "tpu.trace_start"() <{level = 10 : i32, message = "bld,bmd->blm"}> : () -> ()
    %cst_15 = arith.constant dense<0.000000e+00> : vector<2x16x16xf32>
    %38 = tpu.matmul %35, %36, %cst_15 {dimension_numbers = #tpu.dot_dimension_numbers<[2], [2], [1], [1], [0, 0, 0, 1, 1, 1], [0], [0]>} : vector<2x16x8xf32>, vector<2x16x8xf32>, vector<2x16x16xf32> -> vector<2x16x16xf32>
    "tpu.trace_stop"() : () -> ()
    %39 = arith.addf %38, %34 : vector<2x16x16xf32>
    %cst_16 = arith.constant dense<0xFF800000> : vector<2x16xf32>
    %40 = vector.multi_reduction <maximumf>, %39, %cst_16 [2] : vector<2x16x16xf32> to vector<2x16xf32>
    %41 = vector.shape_cast %40 : vector<2x16xf32> to vector<2x16x1xf32>
    %42 = vector.broadcast %41 : vector<2x16x1xf32> to vector<2x16x16xf32>
    %43 = arith.subf %39, %42 : vector<2x16x16xf32>
    %44 = math.exp %43 : vector<2x16x16xf32>
    %cst_17 = arith.constant dense<0.000000e+00> : vector<2x16xf32>
    %45 = vector.multi_reduction <add>, %44, %cst_17 [2] : vector<2x16x16xf32> to vector<2x16xf32>
    %46 = vector.shape_cast %45 : vector<2x16xf32> to vector<2x16x1xf32>
    %47 = tpu.reciprocal %46 {approx = true} : vector<2x16x1xf32> -> vector<2x16x1xf32>
    %48 = vector.broadcast %47 : vector<2x16x1xf32> to vector<2x16x16xf32>
    %49 = arith.mulf %44, %48 : vector<2x16x16xf32>
    "tpu.trace_start"() <{level = 10 : i32, message = "blm,bmd->bld"}> : () -> ()
    %cst_18 = arith.constant dense<0.000000e+00> : vector<2x16x8xf32>
    %50 = tpu.matmul %49, %37, %cst_18 {dimension_numbers = #tpu.dot_dimension_numbers<[2], [1], [1], [2], [0, 0, 0, 1, 1, 2], [0], [0]>} : vector<2x16x16xf32>, vector<2x16x8xf32>, vector<2x16x8xf32> -> vector<2x16x8xf32>
    "tpu.trace_stop"() : () -> ()
    %51 = vector.extract_strided_slice %28 {offsets = [0, 0, 8], sizes = [2, 16, 8], strides = [1, 1, 1]} : vector<2x16x32xf32> to vector<2x16x8xf32>
    %52 = vector.extract_strided_slice %29 {offsets = [0, 0, 8], sizes = [2, 16, 8], strides = [1, 1, 1]} : vector<2x16x32xf32> to vector<2x16x8xf32>
    %53 = vector.extract_strided_slice %30 {offsets = [0, 0, 8], sizes = [2, 16, 8], strides = [1, 1, 1]} : vector<2x16x32xf32> to vector<2x16x8xf32>
    "tpu.trace_start"() <{level = 10 : i32, message = "bld,bmd->blm"}> : () -> ()
    %cst_19 = arith.constant dense<0.000000e+00> : vector<2x16x16xf32>
    %54 = tpu.matmul %51, %52, %cst_19 {dimension_numbers = #tpu.dot_dimension_numbers<[2], [2], [1], [1], [0, 0, 0, 1, 1, 1], [0], [0]>} : vector<2x16x8xf32>, vector<2x16x8xf32>, vector<2x16x16xf32> -> vector<2x16x16xf32>
    "tpu.trace_stop"() : () -> ()
    %55 = arith.addf %54, %34 : vector<2x16x16xf32>
    %cst_20 = arith.constant dense<0xFF800000> : vector<2x16xf32>
    %56 = vector.multi_reduction <maximumf>, %55, %cst_20 [2] : vector<2x16x16xf32> to vector<2x16xf32>
    %57 = vector.shape_cast %56 : vector<2x16xf32> to vector<2x16x1xf32>
    %58 = vector.broadcast %57 : vector<2x16x1xf32> to vector<2x16x16xf32>
    %59 = arith.subf %55, %58 : vector<2x16x16xf32>
    %60 = math.exp %59 : vector<2x16x16xf32>
    %cst_21 = arith.constant dense<0.000000e+00> : vector<2x16xf32>
    %61 = vector.multi_reduction <add>, %60, %cst_21 [2] : vector<2x16x16xf32> to vector<2x16xf32>
    %62 = vector.shape_cast %61 : vector<2x16xf32> to vector<2x16x1xf32>
    %63 = tpu.reciprocal %62 {approx = true} : vector<2x16x1xf32> -> vector<2x16x1xf32>
    %64 = vector.broadcast %63 : vector<2x16x1xf32> to vector<2x16x16xf32>
    %65 = arith.mulf %60, %64 : vector<2x16x16xf32>
    "tpu.trace_start"() <{level = 10 : i32, message = "blm,bmd->bld"}> : () -> ()
    %cst_22 = arith.constant dense<0.000000e+00> : vector<2x16x8xf32>
    %66 = tpu.matmul %65, %53, %cst_22 {dimension_numbers = #tpu.dot_dimension_numbers<[2], [1], [1], [2], [0, 0, 0, 1, 1, 2], [0], [0]>} : vector<2x16x16xf32>, vector<2x16x8xf32>, vector<2x16x8xf32> -> vector<2x16x8xf32>
    "tpu.trace_stop"() : () -> ()
    %67 = vector.extract_strided_slice %28 {offsets = [0, 0, 16], sizes = [2, 16, 8], strides = [1, 1, 1]} : vector<2x16x32xf32> to vector<2x16x8xf32>
    %68 = vector.extract_strided_slice %29 {offsets = [0, 0, 16], sizes = [2, 16, 8], strides = [1, 1, 1]} : vector<2x16x32xf32> to vector<2x16x8xf32>
    %69 = vector.extract_strided_slice %30 {offsets = [0, 0, 16], sizes = [2, 16, 8], strides = [1, 1, 1]} : vector<2x16x32xf32> to vector<2x16x8xf32>
    "tpu.trace_start"() <{level = 10 : i32, message = "bld,bmd->blm"}> : () -> ()
    %cst_23 = arith.constant dense<0.000000e+00> : vector<2x16x16xf32>
    %70 = tpu.matmul %67, %68, %cst_23 {dimension_numbers = #tpu.dot_dimension_numbers<[2], [2], [1], [1], [0, 0, 0, 1, 1, 1], [0], [0]>} : vector<2x16x8xf32>, vector<2x16x8xf32>, vector<2x16x16xf32> -> vector<2x16x16xf32>
    "tpu.trace_stop"() : () -> ()
    %71 = arith.addf %70, %34 : vector<2x16x16xf32>
    %cst_24 = arith.constant dense<0xFF800000> : vector<2x16xf32>
    %72 = vector.multi_reduction <maximumf>, %71, %cst_24 [2] : vector<2x16x16xf32> to vector<2x16xf32>
    %73 = vector.shape_cast %72 : vector<2x16xf32> to vector<2x16x1xf32>
    %74 = vector.broadcast %73 : vector<2x16x1xf32> to vector<2x16x16xf32>
    %75 = arith.subf %71, %74 : vector<2x16x16xf32>
    %76 = math.exp %75 : vector<2x16x16xf32>
    %cst_25 = arith.constant dense<0.000000e+00> : vector<2x16xf32>
    %77 = vector.multi_reduction <add>, %76, %cst_25 [2] : vector<2x16x16xf32> to vector<2x16xf32>
    %78 = vector.shape_cast %77 : vector<2x16xf32> to vector<2x16x1xf32>
    %79 = tpu.reciprocal %78 {approx = true} : vector<2x16x1xf32> -> vector<2x16x1xf32>
    %80 = vector.broadcast %79 : vector<2x16x1xf32> to vector<2x16x16xf32>
    %81 = arith.mulf %76, %80 : vector<2x16x16xf32>
    "tpu.trace_start"() <{level = 10 : i32, message = "blm,bmd->bld"}> : () -> ()
    %cst_26 = arith.constant dense<0.000000e+00> : vector<2x16x8xf32>
    %82 = tpu.matmul %81, %69, %cst_26 {dimension_numbers = #tpu.dot_dimension_numbers<[2], [1], [1], [2], [0, 0, 0, 1, 1, 2], [0], [0]>} : vector<2x16x16xf32>, vector<2x16x8xf32>, vector<2x16x8xf32> -> vector<2x16x8xf32>
    "tpu.trace_stop"() : () -> ()
    %83 = vector.extract_strided_slice %28 {offsets = [0, 0, 24], sizes = [2, 16, 8], strides = [1, 1, 1]} : vector<2x16x32xf32> to vector<2x16x8xf32>
    %84 = vector.extract_strided_slice %29 {offsets = [0, 0, 24], sizes = [2, 16, 8], strides = [1, 1, 1]} : vector<2x16x32xf32> to vector<2x16x8xf32>
    %85 = vector.extract_strided_slice %30 {offsets = [0, 0, 24], sizes = [2, 16, 8], strides = [1, 1, 1]} : vector<2x16x32xf32> to vector<2x16x8xf32>
    "tpu.trace_start"() <{level = 10 : i32, message = "bld,bmd->blm"}> : () -> ()
    %cst_27 = arith.constant dense<0.000000e+00> : vector<2x16x16xf32>
    %86 = tpu.matmul %83, %84, %cst_27 {dimension_numbers = #tpu.dot_dimension_numbers<[2], [2], [1], [1], [0, 0, 0, 1, 1, 1], [0], [0]>} : vector<2x16x8xf32>, vector<2x16x8xf32>, vector<2x16x16xf32> -> vector<2x16x16xf32>
    "tpu.trace_stop"() : () -> ()
    %87 = arith.addf %86, %34 : vector<2x16x16xf32>
    %cst_28 = arith.constant dense<0xFF800000> : vector<2x16xf32>
    %88 = vector.multi_reduction <maximumf>, %87, %cst_28 [2] : vector<2x16x16xf32> to vector<2x16xf32>
    %89 = vector.shape_cast %88 : vector<2x16xf32> to vector<2x16x1xf32>
    %90 = vector.broadcast %89 : vector<2x16x1xf32> to vector<2x16x16xf32>
    %91 = arith.subf %87, %90 : vector<2x16x16xf32>
    %92 = math.exp %91 : vector<2x16x16xf32>
    %cst_29 = arith.constant dense<0.000000e+00> : vector<2x16xf32>
    %93 = vector.multi_reduction <add>, %92, %cst_29 [2] : vector<2x16x16xf32> to vector<2x16xf32>
    %94 = vector.shape_cast %93 : vector<2x16xf32> to vector<2x16x1xf32>
    %95 = tpu.reciprocal %94 {approx = true} : vector<2x16x1xf32> -> vector<2x16x1xf32>
    %96 = vector.broadcast %95 : vector<2x16x1xf32> to vector<2x16x16xf32>
    %97 = arith.mulf %92, %96 : vector<2x16x16xf32>
    "tpu.trace_start"() <{level = 10 : i32, message = "blm,bmd->bld"}> : () -> ()
    %cst_30 = arith.constant dense<0.000000e+00> : vector<2x16x8xf32>
    %98 = tpu.matmul %97, %85, %cst_30 {dimension_numbers = #tpu.dot_dimension_numbers<[2], [1], [1], [2], [0, 0, 0, 1, 1, 2], [0], [0]>} : vector<2x16x16xf32>, vector<2x16x8xf32>, vector<2x16x8xf32> -> vector<2x16x8xf32>
    "tpu.trace_stop"() : () -> ()
    %99 = tpu.concatenate %50, %66, %82, %98 in 2 : vector<2x16x8xf32>, vector<2x16x8xf32>, vector<2x16x8xf32>, vector<2x16x8xf32> -> vector<2x16x32xf32>
    %100 = vector.shape_cast %99 : vector<2x16x32xf32> to vector<32x32xf32>
    %cst_31 = arith.constant dense<0.000000e+00> : vector<32x32xf32>
    %101 = tpu.matmul %100, %9, %cst_31 {dimension_numbers = #tpu.dot_dimension_numbers<[1], [0], [0], [1], [0, 0, 1, 1], [], []>} : vector<32x32xf32>, vector<32x32xf32>, vector<32x32xf32> -> vector<32x32xf32>
    %102 = vector.broadcast %13 : vector<1x32xf32> to vector<32x32xf32>
    %103 = arith.addf %101, %102 : vector<32x32xf32>
    %104 = arith.addf %21, %103 : vector<32x32xf32>
    %cst_32 = arith.constant dense<0.000000e+00> : vector<32xf32>
    %105 = vector.multi_reduction <add>, %104, %cst_32 [1] : vector<32x32xf32> to vector<32xf32>
    %106 = vector.shape_cast %105 : vector<32xf32> to vector<32x1xf32>
    %cst_33 = arith.constant 3.200000e+01 : f32
    %107 = vector.broadcast %cst_33 : f32 to vector<32x1xf32>
    %108 = arith.divf %106, %107 : vector<32x1xf32>
    %109 = vector.broadcast %108 : vector<32x1xf32> to vector<32x32xf32>
    %110 = arith.subf %104, %109 : vector<32x32xf32>
    %111 = arith.mulf %110, %110 : vector<32x32xf32>
    %cst_34 = arith.constant dense<0.000000e+00> : vector<32xf32>
    %112 = vector.multi_reduction <add>, %111, %cst_34 [1] : vector<32x32xf32> to vector<32xf32>
    %113 = vector.shape_cast %112 : vector<32xf32> to vector<32x1xf32>
    %cst_35 = arith.constant 3.200000e+01 : f32
    %114 = vector.broadcast %cst_35 : f32 to vector<32x1xf32>
    %115 = arith.divf %113, %114 : vector<32x1xf32>
    %116 = vector.broadcast %108 : vector<32x1xf32> to vector<32x32xf32>
    %117 = arith.subf %104, %116 : vector<32x32xf32>
    %cst_36 = arith.constant 9.99999974E-6 : f32
    %118 = vector.broadcast %cst_36 : f32 to vector<32x1xf32>
    %119 = arith.addf %115, %118 : vector<32x1xf32>
    %120 = math.rsqrt %119 : vector<32x1xf32>
    %121 = vector.broadcast %120 : vector<32x1xf32> to vector<32x32xf32>
    %122 = arith.mulf %117, %121 : vector<32x32xf32>
    %123 = vector.broadcast %14 : vector<1x32xf32> to vector<32x32xf32>
    %124 = arith.mulf %122, %123 : vector<32x32xf32>
    %125 = vector.broadcast %15 : vector<1x32xf32> to vector<32x32xf32>
    %126 = arith.addf %124, %125 : vector<32x32xf32>
    %cst_37 = arith.constant dense<0.000000e+00> : vector<32x64xf32>
    %127 = tpu.matmul %126, %10, %cst_37 {dimension_numbers = #tpu.dot_dimension_numbers<[1], [0], [0], [1], [0, 0, 1, 1], [], []>} : vector<32x32xf32>, vector<32x64xf32>, vector<32x64xf32> -> vector<32x64xf32>
    %128 = vector.broadcast %16 : vector<1x64xf32> to vector<32x64xf32>
    %129 = arith.addf %127, %128 : vector<32x64xf32>
    %130 = arith.mulf %129, %129 : vector<32x64xf32>
    %131 = arith.mulf %129, %130 : vector<32x64xf32>
    %cst_38 = arith.constant 4.471500e-02 : f32
    %132 = vector.broadcast %cst_38 : f32 to vector<32x64xf32>
    %133 = arith.mulf %132, %131 : vector<32x64xf32>
    %134 = arith.addf %129, %133 : vector<32x64xf32>
    %cst_39 = arith.constant 0.797884583 : f32
    %135 = vector.broadcast %cst_39 : f32 to vector<32x64xf32>
    %136 = arith.mulf %135, %134 : vector<32x64xf32>
    %137 = math.tanh %136 : vector<32x64xf32>
    %cst_40 = arith.constant 1.000000e+00 : f32
    %138 = vector.broadcast %cst_40 : f32 to vector<32x64xf32>
    %139 = arith.addf %138, %137 : vector<32x64xf32>
    %cst_41 = arith.constant 5.000000e-01 : f32
    %140 = vector.broadcast %cst_41 : f32 to vector<32x64xf32>
    %141 = arith.mulf %140, %139 : vector<32x64xf32>
    %142 = arith.mulf %129, %141 : vector<32x64xf32>
    %cst_42 = arith.constant dense<0.000000e+00> : vector<32x32xf32>
    %143 = tpu.matmul %142, %11, %cst_42 {dimension_numbers = #tpu.dot_dimension_numbers<[1], [0], [0], [1], [0, 0, 1, 1], [], []>} : vector<32x64xf32>, vector<64x32xf32>, vector<32x32xf32> -> vector<32x32xf32>
    %144 = vector.broadcast %17 : vector<1x32xf32> to vector<32x32xf32>
    %145 = arith.addf %143, %144 : vector<32x32xf32>
    %146 = arith.addf %126, %145 : vector<32x32xf32>
    %cst_43 = arith.constant dense<0.000000e+00> : vector<32xf32>
    %147 = vector.multi_reduction <add>, %146, %cst_43 [1] : vector<32x32xf32> to vector<32xf32>
    %148 = vector.shape_cast %147 : vector<32xf32> to vector<32x1xf32>
    %cst_44 = arith.constant 3.200000e+01 : f32
    %149 = vector.broadcast %cst_44 : f32 to vector<32x1xf32>
    %150 = arith.divf %148, %149 : vector<32x1xf32>
    %151 = vector.broadcast %150 : vector<32x1xf32> to vector<32x32xf32>
    %152 = arith.subf %146, %151 : vector<32x32xf32>
    %153 = arith.mulf %152, %152 : vector<32x32xf32>
    %cst_45 = arith.constant dense<0.000000e+00> : vector<32xf32>
    %154 = vector.multi_reduction <add>, %153, %cst_45 [1] : vector<32x32xf32> to vector<32xf32>
    %155 = vector.shape_cast %154 : vector<32xf32> to vector<32x1xf32>
    %cst_46 = arith.constant 3.200000e+01 : f32
    %156 = vector.broadcast %cst_46 : f32 to vector<32x1xf32>
    %157 = arith.divf %155, %156 : vector<32x1xf32>
    %158 = vector.broadcast %150 : vector<32x1xf32> to vector<32x32xf32>
    %159 = arith.subf %146, %158 : vector<32x32xf32>
    %cst_47 = arith.constant 9.99999974E-6 : f32
    %160 = vector.broadcast %cst_47 : f32 to vector<32x1xf32>
    %161 = arith.addf %157, %160 : vector<32x1xf32>
    %162 = math.rsqrt %161 : vector<32x1xf32>
    %163 = vector.broadcast %162 : vector<32x1xf32> to vector<32x32xf32>
    %164 = arith.mulf %159, %163 : vector<32x32xf32>
    %165 = vector.broadcast %18 : vector<1x32xf32> to vector<32x32xf32>
    %166 = arith.mulf %164, %165 : vector<32x32xf32>
    %167 = vector.broadcast %19 : vector<1x32xf32> to vector<32x32xf32>
    %168 = arith.addf %166, %167 : vector<32x32xf32>
    %169 = vector.shape_cast %168 : vector<32x32xf32> to vector<2x16x32xf32>
    %c0_48 = arith.constant 0 : index
    %c0_49 = arith.constant 0 : index
    %c0_50 = arith.constant 0 : index
    %170 = vector.load %arg10[%c0_48, %c0_49, %c0_50] : memref<2x16x32xf32, #tpu.memory_space<vmem>>, vector<2x16x32xf32>
    tpu.vector_store %arg10[%c0_48, %c0_49, %c0_50], %169 {strides = array<i32>} : memref<2x16x32xf32, #tpu.memory_space<vmem>>, vector<2x16x32xf32>,
    return
  }
  func.func @transform_0(%arg0: i32, %arg1: i32) -> (i32, i32, i32) {
    %c0_i32 = arith.constant 0 : i32
    %c0_i32_0 = arith.constant 0 : i32
    %c0_i32_1 = arith.constant 0 : i32
    return %arg0, %c0_i32, %c0_i32_0 : i32, i32, i32
  }
  func.func @transform_1(%arg0: i32, %arg1: i32) -> (i32, i32, i32) {
    %c0_i32 = arith.constant 0 : i32
    %c0_i32_0 = arith.constant 0 : i32
    %c0_i32_1 = arith.constant 0 : i32
    return %arg0, %c0_i32, %c0_i32_0 : i32, i32, i32
  }
  func.func @transform_2(%arg0: i32, %arg1: i32) -> (i32, i32, i32) {
    %c0_i32 = arith.constant 0 : i32
    %c0_i32_0 = arith.constant 0 : i32
    %c0_i32_1 = arith.constant 0 : i32
    return %arg0, %c0_i32, %c0_i32_0 : i32, i32, i32
  }
  func.func @transform_3(%arg0: i32, %arg1: i32) -> (i32, i32, i32) {
    %c0_i32 = arith.constant 0 : i32
    %c0_i32_0 = arith.constant 0 : i32
    %c0_i32_1 = arith.constant 0 : i32
    return %arg0, %c0_i32, %c0_i32_0 : i32, i32, i32
  }
  func.func @transform_4(%arg0: i32, %arg1: i32) -> (i32, i32, i32) {
    %c0_i32 = arith.constant 0 : i32
    %c0_i32_0 = arith.constant 0 : i32
    %c0_i32_1 = arith.constant 0 : i32
    return %arg0, %c0_i32, %c0_i32_0 : i32, i32, i32
  }
  func.func @transform_5(%arg0: i32, %arg1: i32) -> (i32, i32) {
    %c0_i32 = arith.constant 0 : i32
    %c0_i32_0 = arith.constant 0 : i32
    %c0_i32_1 = arith.constant 0 : i32
    return %c0_i32, %c0_i32_0 : i32, i32
  }
  func.func @transform_6(%arg0: i32, %arg1: i32) -> (i32, i32, i32) {
    %c0_i32 = arith.constant 0 : i32
    %c0_i32_0 = arith.constant 0 : i32
    %c0_i32_1 = arith.constant 0 : i32
    return %arg1, %c0_i32, %c0_i32_0 : i32, i32, i32
  }
  func.func @transform_7(%arg0: i32, %arg1: i32) -> (i32, i32, i32) {
    %c0_i32 = arith.constant 0 : i32
    %c0_i32_0 = arith.constant 0 : i32
    %c0_i32_1 = arith.constant 0 : i32
    return %arg1, %c0_i32, %c0_i32_0 : i32, i32, i32
  }
  func.func @transform_8(%arg0: i32, %arg1: i32) -> (i32, i32, i32) {
    %c0_i32 = arith.constant 0 : i32
    %c0_i32_0 = arith.constant 0 : i32
    %c0_i32_1 = arith.constant 0 : i32
    return %arg0, %c0_i32, %c0_i32_0 : i32, i32, i32
  }
}

</mosaic_0001>

<bundles_post_ra>
// kernel: model_sub_forward.1
= control target key start
LH: loop header
LB: loop body
LE: loop exit
PB: predicated region body
PF: predicated region fallthrough
CT: control target
= control target key end

     0   :  { %s4842_s0 = inlined_call_operand.vmem [shape: f32[4,16,1], index: 0, kind: input, shape index: {}]   ;;  %s4843_s1 = inlined_call_operand.vmem [shape: f32[4,1,16], index: 1, kind: input, shape index: {}]   ;;  %s4844_s2 = inlined_call_operand.vmem [shape: f32[4,16,16], index: 2, kind: input, shape index: {}]   ;;  %s4845_s3 = inlined_call_operand.vmem [shape: f32[4,16,32], index: 3, kind: input, shape index: {}]   ;;  %s4846_s4 = inlined_call_operand.vmem [shape: f32[4,16,32], index: 4, kind: input, shape index: {}]   ;;  %s4847_s5 = inlined_call_operand.vmem [shape: f32[2,32], index: 5, kind: input, shape index: {}]   ;;  %s4848_s6 = inlined_call_operand.vmem [shape: f32[2,96,192], index: 6, kind: input, shape index: {}]   ;;  %s4849_s7 = inlined_call_operand.vmem [shape: f32[2,8,96], index: 7, kind: input, shape index: {}]   ;;  %s4850_s8 = inlined_call_operand.hbm [shape: f32[4,16,32], index: 8, kind: output, shape index: {}]  }
   0x1   :  { %4861 = sst [smem:[#allocation14_spill]] %s4850_s8 }
   0x2   :  { %13 = vsyncpa [#allocation3], 0 }
   0x3   :  { %15 = vsyncpa [#allocation3 + $0x1], 0  ;;  %s4256_s27 = smov 0   ;;  %s4258_s28 = smov 0  }
   0x4   :  { %s4260_s29 = smov 0   ;;  %s4262_s30 = smov 0  }
   0x5   :  { %s4264_s9 = smov 0   ;;  %s4266_s10 = smov 0  }
   0x6   :  { %s4268_s11 = smov 0   ;;  %s4270_s12 = smov 0  }
   0x7 LB: > { %4862 = sst [smem:[#allocation5_spill]] %s4163_s27  ;;  %s3277_s13 = sadd.s32 4294967295, %s4191_s12   ;;  %s4191_s12 = sphi %s4270_s12, %s21_s12   ;;  %s4187_s11 = sphi %s4268_s11, %s4885_s11   ;;  %s4183_s10 = sphi %s4266_s10, %s4884_s10   ;;  %s4179_s9 = sphi %s4264_s9, %s4883_s9   ;;  %s4175_s30 = sphi %s4262_s30, %s4882_s30   ;;  %s4171_s29 = sphi %s4260_s29, %s4881_s29   ;;  %s4167_s28 = sphi %s4258_s28, %s4887_s28   ;;  %s4163_s27 = sphi %s4256_s27, %s4886_s27  }
   0x8   : > { %4863 = sst [smem:[#allocation6_spill]] %s4171_s29  ;;  %s3278_s14 = sadd.s32 4294967294, %s4191_s12  }
   0x9   : > { %4864 = sst [smem:[#allocation7_spill]] %s4183_s10  ;;  %s30_s15 = sadd.s32 1, %s4183_s10 }
   0xa   : > { %4865 = sst [smem:[#allocation8_spill]] %s4187_s11  ;;  %p31_p0 = scmp.ge.s32.totalorder %s30_s15, 2 }
   0xb   : > { %4866 = sst [smem:[#allocation9_spill]] %s4191_s12  ;;  %s33_s16 = sadd.s32 1, %s4187_s11 }
   0xc   : > { %p253_p1 = scmp.ne.s32.totalorder %s4171_s29, %s4167_s28  ;;  %p254_p2 = scmp.eq.s32.totalorder %s3277_s13, 3 }
   0xd   : > { %s4889_s15 = smov (%p31_p0, %s30_s15), 0  ;;  %s4891_s16 = smov (!%p31_p0, %s33_s16), %s4187_s11 }
   0xe   : > { %4867 = sst [smem:[#allocation10_spill]] %s4889_s15  ;;  %p4305_p3 = por %p254_p2, %p253_p1 }
   0xf   : > { %p259_p4 = scmp.ne.s32.totalorder %s4167_s28, %s4163_s27  ;;  %p35_p5 = scmp.ge.s32.totalorder %s4891_s16, 2 }
  0x10   : > { %p260_p6 = scmp.eq.s32.totalorder %s3278_s14, 3  ;;  %p3281_p7 = scmp.ge.s32.totalorder %s4191_s12, 1 }
  0x11   : > { %p344_p8 = scmp.lt.s32.totalorder %s4191_s12, 5  ;;  %s4893_s16 = smov (%p35_p5, %s4891_s16), 0 }
  0x12   : > { %4869 = sst [smem:[#allocation11_spill]] %s4893_s16  ;;  %p4315_p9 = por %p260_p6, %p259_p4 }
  0x13   : > { %p345_p10 = pnand %p3281_p7, %p344_p8  ;;  %s240_s19 = ssub.s32 %s4187_s11, %s4893_s16 }
  0x14   : > { %s4870_s18 = scalar_select %p4315_p9, 1, 0 }
  0x15   : > { %s243_s20 = sadd.s32 1, %s4171_s29  ;;  %p241_p11 = scmp.eq.s32.totalorder %s240_s19, 0 }
  0x16   : > { %4871 = sst [smem:[#allocation12_spill]] %s4870_s18  ;;  %348 = sbr.rel (%p345_p10) target bundleno = 5101 (0x13ed), region = 52 }
  0x17   : > { %s4323_s21 = scalar_select %p241_p11, %s4171_s29, %s243_s20  }
  0x18   : > { %s4855_s22 = sand.u32 (!%p345_p10), 1, %s4167_s28   ;;  %s3283_s23 = sshll.u32 (!%p345_p10), %s4179_s9, 1 }
  0x19   : > { %4872 = sst [smem:[#allocation13_spill]] %s4323_s21  ;;  %s3282_s24 = sshll.u32 (!%p345_p10), %s4855_s22, 5 }
  0x1a   : > { %p411_p12 = scmp.lt.s32.totalorder (!%p345_p10), %s3283_s23, 3  ;;  %p443_p13 = scmp.lt.s32.totalorder (!%p345_p10), %s4175_s30, 1 }
  0x1b   : > { %s4370_s12 = scalar_lea.vmem (!%p345_p10), [#allocation2], %s3282_s24  ;;  %p3298_p0 = scmp.ne.s32.totalorder (!%p345_p10), %s4175_s30, 0 }
  0x1d   : > { %s4895_s23 = smov (!%p411_p12, %s3283_s23), 3  ;;  %v4193_v6 = vmov (!%p3298_p0), 0   ;;  %vm511_vm0 = vcmask (!%p3298_p0), 130048   ;;  %vm743_vm1 = vcmask (!%p3298_p0), 261120  }
  0x1e   : > { %s444_s25 = scalar_select %p443_p13, %s4175_s30, 1 }
  0x1f   : > { %s3375_s26 = sshll.u32 %s4895_s23, 4  ;;  %s4334_s19 = scalar_lea.vmem %s4843_s1, %s4895_s23  ;;  %3897 = vset.pattern.permute.xlu1 (!%p3298_p0), %v4193_v6  ;;  %3896 = vset.pattern.permute.xlu0 (!%p3298_p0), %v4193_v6 }
  0x20   : > { %s415_s15 = scalar_lea.vmem %s4842_s0, %s3375_s26  ;;  %s427_s21 = scalar_lea.vmem %s4844_s2, %s3375_s26  ;;  %v3299_v9 = vld [vmem:[%s4334_s19] ss:$0 sm:$0xff] (!%p3298_p0)  ;;  %v3300_v14 = vld [vmem:[%s4334_s19 + $0x1] ss:$0 sm:$0xff] (!%p3298_p0) }
  0x21   : > { %s4345_s18 = scalar_lea.vmem %s4845_s3, %s3375_s26  ;;  %s4350_s8 = scalar_lea.vmem %s4846_s4, %s3375_s26  ;;  %v4352_v0 = vld [vmem:[%s427_s21] sm:$0xff]  ;;  %v4354_v1 = vld [vmem:[%s427_s21 + $0x8] sm:$0xff]  ;;  %v4356_v2 = vld [vmem:[%s427_s21 + $0x10] sm:$0xff] }
  0x22   : > { %s3807_s16 = smul.u32 192, %s444_s25  ;;  %s3297_s23 = sshll.u32 %s444_s25, 3  ;;  %v4358_v3 = vld [vmem:[%s427_s21 + $0x18] sm:$0xff]  ;;  %v462_v4 = vld [vmem:[%s415_s15 + $0x8] sm:$0xff] (!%p3298_p0)  ;;  %v461_v5 = vld [vmem:[%s415_s15] sm:$0xff] (!%p3298_p0) }
  0x23   : > { %s4363_s29 = scalar_lea.vmem %s4849_s7, %s3297_s23  ;;  %460 = sbr.rel (%p3298_p0) target bundleno = 871 (0x367), region = 56  ;;  %478 = vperm.xlu1 (!%p3298_p0), %3897, %v462_v4   ;;  %473 = vperm.xlu0 (!%p3298_p0), %3896, %v461_v5   ;;  %v464_v7 = vld [vmem:[%s415_s15 + $0x18] sm:$0xff] (!%p3298_p0)  ;;  %v463_v8 = vld [vmem:[%s415_s15 + $0x10] sm:$0xff] (!%p3298_p0)  ;;  %v698_v27 = vsub.f32 (!%p3298_p0), 1.0, %v461_v5  ;;  %v699_v30 = vsub.f32 (!%p3298_p0), 1.0, %v462_v4  ;;  %v467_v31 = vld [vmem:[%s4345_s18] sm:$0xff] (!%p3298_p0) }
  0x24   : > { %s4368_s27 = scalar_lea.vmem %s4848_s6, %s3807_s16  ;;  %v700_v28 = vsub.f32 (!%p3298_p0), 1.0, %v463_v8  ;;  %v701_v29 = vsub.f32 (!%p3298_p0), 1.0, %v464_v7  ;;  %v468_v32 = vld [vmem:[%s4345_s18 + $0x8] sm:$0xff] (!%p3298_p0)  ;;  %v470_v34 = vld [vmem:[%s4345_s18 + $0x18] sm:$0xff] (!%p3298_p0)  ;;  %v469_v35 = vld [vmem:[%s4345_s18 + $0x10] sm:$0xff] (!%p3298_p0) }
  0x25   : > { %v3679_v33 = vpack.c.bf16 (!%p3298_p0), %v468_v32, %v467_v31  ;;  %v3683_v36 = vpack.c.bf16 (!%p3298_p0), %v470_v34, %v469_v35  ;;  %v736_v62 = vld [vmem:[%s4350_s8 + $0x8] sm:$0xff] (!%p3298_p0)  ;;  %v735_v6 = vld [vmem:[%s4350_s8] sm:$0xff] (!%p3298_p0) }
  0x27   : > { %488 = vperm.xlu1 (!%p3298_p0), %3897, %v464_v7   ;;  %483 = vperm.xlu0 (!%p3298_p0), %3896, %v463_v8  }
  0x28   : > { %3680 = vmatprep.subr.bf16.mxu0 (!%p3298_p0), %v3679_v33  ;;  %3684 = vmatprep.subr.bf16.mxu1 (!%p3298_p0), %v3683_v36 }
  0x29   : > { %3682 = vmatpush3.bf16.msra.mxu0 (!%p3298_p0), %v3679_v33  ;;  %3686 = vmatpush3.bf16.msra.mxu1 (!%p3298_p0), %v3683_v36 }
  0xa2   : > { %v4374_v10 = vpop.permute.xlu1 %478  ;;  %v4376_v11 = vpop.permute.xlu0 %473 }
  0xa3   : > { %v504_v12 = vmul.f32 %v3299_v9, %v4374_v10  ;;  %v503_v13 = vmul.f32 %v3299_v9, %v4376_v11 }
  0xa5   : > { %v508_v15 = vmul.f32 %v504_v12, %v4354_v1  ;;  %v507_v16 = vmul.f32 %v503_v13, %v4352_v0 }
  0xa6   : > { %v4383_v17 = vpop.permute.xlu1 %488  ;;  %v4385_v18 = vpop.permute.xlu0 %483 }
  0xa7   : > { %v506_v19 = vmul.f32 %v3300_v14, %v4383_v17  ;;  %v505_v20 = vmul.f32 %v3300_v14, %v4385_v18  ;;  %v512_v21 = vsel %vm511_vm0, %v507_v16, 0.0  ;;  %v515_v23 = vsel %vm511_vm0, %v508_v15, 0.0 }
  0xa8   : > { %513 = vadd.xlane.f32.xlu0 %v512_v21 }
  0xa9   : > { %v509_v22 = vmul.f32 %v505_v20, %v4356_v2  ;;  %v510_v24 = vmul.f32 %v506_v19, %v4358_v3 }
  0xab   : > { %v518_v25 = vsel %vm511_vm0, %v509_v22, 0.0  ;;  %v521_v26 = vsel %vm511_vm0, %v510_v24, 0.0 }
  0xac   : > { %516 = vadd.xlane.f32.xlu0 %v515_v23  ;;  %519 = vadd.xlane.f32.xlu1 %v518_v25 }
  0xb0   : > { %522 = vadd.xlane.f32.xlu0 %v521_v26 }
  0xbd   : > { %704 = vperm.xlu1 %3897, %v698_v27  }
  0xc1   : > { %714 = vperm.xlu1 %3897, %v700_v28  }
  0xc5   : > { %719 = vperm.xlu1 %3897, %v701_v29  }
  0xc6   : > { %709 = vperm.xlu0 %3896, %v699_v30  }
 0x135   : > { %v514_v37 = vpop.xlane.xlu0 %513 }
 0x136   : > { %v524_v38 = vadd.f32 1e-10, %v514_v37 }
 0x138   : > { %3898 = vrcp.f32 %v524_v38 }
 0x139   : > { %v520_v39 = vpop.xlane.xlu1 %519  ;;  %v517_v40 = vpop.xlane.xlu0 %516 }
 0x13a   : > { %v526_v41 = vadd.f32 1e-10, %v520_v39  ;;  %v525_v42 = vadd.f32 1e-10, %v517_v40 }
 0x13c   : > { %3900 = vrcp.f32 %v526_v41 }
 0x13d   : > { %3902 = vrcp.f32 %v525_v42  ;;  %v523_v43 = vpop.xlane.xlu0 %522  ;;  %v705_v53 = vpop.permute.xlu1 %704 }
 0x13e   : > { %v527_v44 = vadd.f32 1e-10, %v523_v43  ;;  %v722_v60 = vmul.f32 %v705_v53, %v467_v31 }
 0x140   : > { %3904 = vrcp.f32 %v527_v44 }
 0x141   : > { %v715_v54 = vpop.permute.xlu1 %714 }
 0x142   : > { %v3899_v45 = vpop.eup %3898  ;;  %v724_v12 = vmul.f32 %v715_v54, %v469_v35 }
 0x143   : > { %v532_v46 = vmul.f32 %v3899_v45, %v507_v16  ;;  %v737_v16 = vld [vmem:[%s4350_s8 + $0x10] sm:$0xff] }
 0x145   : > { %3493 = vmatprep.mubr.msk.f32.mxu0 %vm511_vm0, %v532_v46  ;;  %v710_v55 = vpop.permute.xlu0 %709  ;;  %v720_v63 = vpop.permute.xlu1 %719 }
 0x146   : > { %v3901_v47 = vpop.eup %3900  ;;  %v723_v57 = vmul.f32 %v710_v55, %v468_v32  ;;  %v725_v14 = vmul.f32 %v720_v63, %v470_v34 }
 0x147   : > { %v3903_v48 = vpop.eup %3902  ;;  %v534_v49 = vmul.f32 %v3901_v47, %v509_v22 }
 0x148   : > { %v533_v50 = vmul.f32 %v3903_v48, %v508_v15  ;;  %v797_v48 = vlaneseq }
 0x149   : > { %3500 = vmatprep.mubr.msk.f32.mxu1 %vm511_vm0, %v534_v49 }
 0x14a   : > { %v3905_v51 = vpop.eup %3904  ;;  %3494 = vmatmul.mubr.msk.f32.vlgmr.msra.gmra.mrb[0].mxu0 %vm511_vm0, %v533_v50  ;;  %v798_v53 = vshrl.u32 %v797_v48, 7 }
 0x14b   : > { %v535_v52 = vmul.f32 %v3905_v51, %v510_v24 }
 0x14d   : > { %3501 = vmatmul.mubr.msk.f32.vlgmr.msra.gmra.mrb[0].mxu1 %vm511_vm0, %v535_v52 }
 0x21d   : > { %v3495_v56 = vpop.f32.mrb[0].mxu0 }
 0x21e   : > { %v727_v58 = vmul.f32 %v3495_v56, %v4374_v10  ;;  %v608_v59 = vpop.f32.mrb[1].mxu0 }
 0x21f   : > { %v726_v61 = vmul.f32 %v608_v59, %v4376_v11  ;;  %v734_v59 = vld [vmem:[%s4847_s5] sm:$0x3] }
 0x220   : > { %v731_v4 = vadd.f32 %v727_v58, %v723_v57  ;;  %v3502_v5 = vpop.f32.mrb[0].mxu1  ;;  %v799_v57 = vsub.s32 0, %v798_v53 }
 0x221   : > { %v730_v7 = vadd.f32 %v726_v61, %v722_v60  ;;  %v729_v8 = vmul.f32 %v3502_v5, %v4383_v17  ;;  %v689_v9 = vpop.f32.mrb[1].mxu1  ;;  %v738_v17 = vld [vmem:[%s4350_s8 + $0x18] sm:$0xff]  ;;  %v807_v60 = vsub.s32 1, %v798_v53 }
 0x222   : > { %v728_v13 = vmul.f32 %v689_v9, %v4385_v18  ;;  %v740_v10 = vadd.f32 %v736_v62, %v731_v4  ;;  %v800_v62 = vrot.slane %v734_v59, %v799_v57 }
 0x223   : > { %v739_v15 = vadd.f32 %v735_v6, %v730_v7  ;;  %v733_v20 = vadd.f32 %v729_v8, %v725_v14  ;;  %v808_v5 = vrot.slane %v734_v59, %v807_v60 }
 0x224   : > { %v732_v19 = vadd.f32 %v728_v13, %v724_v12  ;;  %v747_v11 = vsel %vm743_vm1, %v740_v10, 0.0 }
 0x225   : > { %748 = vadd.xlane.f32.xlu1 %v747_v11  ;;  %v744_v21 = vsel %vm743_vm1, %v739_v15, 0.0  ;;  %v742_v24 = vadd.f32 %v738_v17, %v733_v20 }
 0x226   : > { %745 = vadd.xlane.f32.xlu0 %v744_v21  ;;  %v741_v22 = vadd.f32 %v737_v16, %v732_v19 }
 0x227   : > { %v753_v18 = vsel %vm743_vm1, %v742_v24, 0.0 }
 0x228   : > { %v750_v23 = vsel %vm743_vm1, %v741_v22, 0.0 }
 0x22a   : > { %751 = vadd.xlane.f32.xlu0 %v750_v23 }
 0x22e   : > { %754 = vadd.xlane.f32.xlu0 %v753_v18 }
 0x2b2   : > { %v749_v25 = vpop.xlane.xlu1 %748 }
 0x2b3   : > { %v758_v26 = vmul.f32 0.03125, %v749_v25  ;;  %v746_v27 = vpop.xlane.xlu0 %745 }
 0x2b4   : > { %v757_v28 = vmul.f32 0.03125, %v746_v27 }
 0x2b5   : > { %v762_v29 = vsub.f32 %v740_v10, %v758_v26 }
 0x2b6   : > { %v761_v30 = vsub.f32 %v739_v15, %v757_v28 }
 0x2b7   : > { %v752_v31 = vpop.xlane.xlu0 %751  ;;  %v766_v32 = vmul.f32 %v762_v29, %v762_v29 }
 0x2b8   : > { %v759_v33 = vmul.f32 0.03125, %v752_v31  ;;  %v765_v34 = vmul.f32 %v761_v30, %v761_v30 }
 0x2b9   : > { %v772_v35 = vsel %vm743_vm1, %v766_v32, 0.0 }
 0x2ba   : > { %v763_v36 = vsub.f32 %v741_v22, %v759_v33  ;;  %773 = vadd.xlane.f32.xlu0 %v772_v35  ;;  %v769_v37 = vsel %vm743_vm1, %v765_v34, 0.0 }
 0x2bb   : > { %770 = vadd.xlane.f32.xlu1 %v769_v37  ;;  %v755_v38 = vpop.xlane.xlu0 %754 }
 0x2bc   : > { %v760_v39 = vmul.f32 0.03125, %v755_v38  ;;  %v767_v40 = vmul.f32 %v763_v36, %v763_v36 }
 0x2be   : > { %v764_v41 = vsub.f32 %v742_v24, %v760_v39  ;;  %v775_v42 = vsel %vm743_vm1, %v767_v40, 0.0 }
 0x2bf   : > { %776 = vadd.xlane.f32.xlu1 %v775_v42 }
 0x2c0   : > { %v768_v43 = vmul.f32 %v764_v41, %v764_v41 }
 0x2c2   : > { %v778_v44 = vsel %vm743_vm1, %v768_v43, 0.0 }
 0x2c3   : > { %779 = vadd.xlane.f32.xlu0 %v778_v44 }
 0x347   : > { %v774_v45 = vpop.xlane.xlu0 %773 }
 0x348   : > { %v782_v46 = vmul.f32 0.03125, %v774_v45  ;;  %v771_v47 = vpop.xlane.xlu1 %770 }
 0x349   : > { %v781_v49 = vmul.f32 0.03125, %v771_v47 }
 0x34a   : > { %v786_v50 = vadd.f32 1e-05, %v782_v46 }
 0x34b   : > { %v785_v51 = vadd.f32 1e-05, %v781_v49 }
 0x34c   : > { %3906 = vrsqrt.f32 %v786_v50  ;;  %v777_v52 = vpop.xlane.xlu1 %776 }
 0x34d   : > { %3908 = vrsqrt.f32 %v785_v51  ;;  %v783_v54 = vmul.f32 0.03125, %v777_v52 }
 0x34f   : > { %v787_v55 = vadd.f32 1e-05, %v783_v54 }
 0x350   : > { %v780_v56 = vpop.xlane.xlu0 %779 }
 0x351   : > { %3910 = vrsqrt.f32 %v787_v55  ;;  %v784_v58 = vmul.f32 0.03125, %v780_v56 }
 0x353   : > { %v788_v61 = vadd.f32 1e-05, %v784_v58 }
 0x355   : > { %3912 = vrsqrt.f32 %v788_v61 }
 0x356   : > { %v3907_v63 = vpop.eup %3906 }
 0x357   : > { %v3909_v4 = vpop.eup %3908  ;;  %v794_v6 = vmul.f32 %v3907_v63, %v762_v29 }
 0x358   : > { %v793_v7 = vmul.f32 %v3909_v4, %v761_v30 }
 0x359   : > { %v802_v8 = vmul.f32 %v800_v62, %v794_v6 }
 0x35a   : > { %v801_v9 = vmul.f32 %v800_v62, %v793_v7 }
 0x35b   : > { %v3911_v12 = vpop.eup %3910  ;;  %v810_v13 = vadd.f32 %v808_v5, %v802_v8 }
 0x35c   : > { %v809_v10 = vadd.f32 %v808_v5, %v801_v9  ;;  %v795_v14 = vmul.f32 %v3911_v12, %v763_v36 }
 0x35d   : > { %814 = vst.msk [vmem:[%s4370_s12 + $0x8] sm:$0xff] %vm743_vm1, %v810_v13 }
 0x35e   : > { %813 = vst.msk [vmem:[%s4370_s12] sm:$0xff] %vm743_vm1, %v809_v10  ;;  %v803_v15 = vmul.f32 %v800_v62, %v795_v14 }
 0x35f   : > { %v3913_v16 = vpop.eup %3912 }
 0x360   : > { %v811_v19 = vadd.f32 %v808_v5, %v803_v15  ;;  %v796_v11 = vmul.f32 %v3913_v16, %v764_v41 }
 0x362   : > { %815 = vst.msk [vmem:[%s4370_s12 + $0x10] sm:$0xff] %vm743_vm1, %v811_v19  ;;  %v804_v20 = vmul.f32 %v800_v62, %v796_v11 }
 0x364   : > { %v812_v21 = vadd.f32 %v808_v5, %v804_v20 }
 0x366   : > { %816 = vst.msk [vmem:[%s4370_s12 + $0x18] sm:$0xff] %vm743_vm1, %v812_v21 }
 0x367 PF: > { %v4431_v22 = vld [vmem:[%s4368_s27] sm:$0xff]  ;;  %v4434_v17 = vld [vmem:[%s4368_s27 + $0x10] sm:$0xff]  ;;  %vm842_vm2 = vcmask 261120   ;;  %v835_v28 = vld [vmem:[%s4370_s12 + $0x8] sm:$0xff]  ;;  %v838_v31 = vlaneseq  ;;  %vm958_vm3 = vcmask 64512   ;;  %s4194_s15 = smov 96  }
 0x368   : > { %v4437_v23 = vld [vmem:[%s4368_s27 + $0x20] sm:$0xff]  ;;  %v3994_v24 = vpack.i.bf16 %v4434_v17, %v4431_v22  ;;  %v3687_v18 = vpack.c.bf16 %v4434_v17, %v4431_v22  ;;  %v4444_v25 = vld [vmem:[%s4368_s27 + $0x30] sm:$0xff]  ;;  %vm4476_vm4 = vmpackc.low %vm958_vm3, %vm958_vm3  ;;  %v944_v59 = vsub.f32 1.0, %v4352_v0  ;;  %v945_v60 = vsub.f32 1.0, %v4354_v1  ;;  %s4195_s18 = smov 64   ;;  %s4196_s21 = smov 88  }
 0x369   : > { %v834_v26 = vld [vmem:[%s4370_s12] sm:$0xff]  ;;  %v3691_v27 = vpack.c.bf16 %v4444_v25, %v4437_v23  ;;  %v836_v29 = vld [vmem:[%s4370_s12 + $0x10] sm:$0xff]  ;;  %v4456_v32 = vshrl.u32 %v838_v31, 7  ;;  %v946_v62 = vsub.f32 1.0, %v4356_v2  ;;  %v947_v5 = vsub.f32 1.0, %v4358_v3  ;;  %s4197_s24 = smov 120  }
 0x36a   : > { %3511 = vmatprep.mubr.msk.f32.mxu1 %vm842_vm2, %v834_v26  ;;  %3688 = vmatprep.subr.bf16.mxu1 %v3687_v18  ;;  %v833_v34 = vld [vmem:[%s4363_s29] sm:$0xff]  ;;  %v4498_v61 = vmul.f32 -1e+09, %v944_v59  ;;  %v4501_v63 = vmul.f32 -1e+09, %v945_v60  ;;  %vm1135_vm5 = vcmask 130048  }
 0x36b   : > { %3690 = vmatpush3.bf16.msra.mxu1 %v3687_v18  ;;  %v840_v33 = vsub.s32 0, %v4456_v32  ;;  %v4505_v8 = vmul.f32 -1e+09, %v946_v62  ;;  %v4508_v0 = vmul.f32 -1e+09, %v947_v5  ;;  %s4198_s25 = smov 56  }
 0x36c   : > { %3692 = vmatprep.subr.bf16.mxu1 %v3691_v27  ;;  %s4199_s26 = smov 80   ;;  %s4200_s14 = smov 112   ;;  %vm2610_vm6 = vcmask 195584   ;;  %vm2946_vm7 = vcmask 523264  }
 0x36d   : > { %v837_v30 = vld [vmem:[%s4370_s12 + $0x18] sm:$0xff]  ;;  %v841_v35 = vrot.slane %v833_v34, %v840_v33  ;;  %s4201_s19 = smov 48   ;;  %s4202_s20 = smov 72  }
 0x36e   : > { %s4203_s16 = smov 104   ;;  %s4204_s23 = smov 40  }
 0x36f   : > { %3694 = vmatpush3.bf16.msra.mxu1 %v3691_v27  ;;  %s4205_s10 = smov 32   ;;  %s4206_s11 = smov 8  }
 0x370   : > { %s4207_s22 = smov 16   ;;  %s4208_s13 = smov 24  }
 0x372   : > { %3512 = vmatmul.mubr.msk.f32.vlgmr.msra.gmra.mrb[0].mxu1 %vm842_vm2, %v835_v28 }
 0x373   : > { %3514 = vmatprep.mubr.msk.f32.mxu1 %vm842_vm2, %v836_v29 }
 0x376   : > { %3515 = vmatmul.mubr.msk.f32.gmra.mrb[2].mxu1 %vm842_vm2, %v837_v30 }
 0x445   : > { %v3513_v36 = vpop.f32.mrb[0].mxu1 }
 0x446   : > { %v927_v37 = vadd.f32 %v3513_v36, %v841_v35  ;;  %v921_v38 = vpop.f32.mrb[1].mxu1 }
 0x447   : > { %v922_v39 = vadd.f32 %v921_v38, %v841_v35 }
 0x448   : > { %v4488_v57 = vmul.f32 0.35355338, %v927_v37 }
 0x449   : > { %v3516_v40 = vpop.f32.mrb[2].mxu1  ;;  %v4460_v41 = vpack.i.bf16 %v927_v37, %v922_v39  ;;  %v4462_v42 = vmul.f32 0.35355338, %v922_v39 }
 0x44a   : > { %v937_v43 = vadd.f32 %v3516_v40, %v841_v35  ;;  %v931_v44 = vpop.f32.mrb[3].mxu1 }
 0x44b   : > { %v932_v45 = vadd.f32 %v931_v44, %v841_v35  ;;  %3915 = vrot.lane.b32.xlu0 %v4460_v41, %s4194_s15  ;;  %3521 = vmatprep.mubr.msk.f32.mxu1 %vm958_vm3, %v4462_v42 }
 0x44c   : > { %v4492_v58 = vmul.f32 0.35355338, %v937_v43 }
 0x44d   : > { %v4467_v46 = vpack.i.bf16 %v937_v43, %v932_v45  ;;  %v4469_v47 = vmul.f32 0.35355338, %v932_v45 }
 0x44f   : > { %3920 = vrot.lane.b32.xlu0 %v4467_v46, %s4194_s15  ;;  %3528 = vmatprep.mubr.msk.f32.mxu0 %vm958_vm3, %v4469_v47  ;;  %s4875_s15 = sld [smem:[#allocation14_spill]] }
 0x4bd   : > { %v3916_v48 = vpop.permute.xlu0 %3915 }
 0x4be   : > { %v3918_v49 = vunpack.i.h.bf16 %v3916_v48  ;;  %v3917_v50 = vunpack.i.l.bf16 %v3916_v48 }
 0x4c0   : > { %v3695_v52 = vpack.c.bf16 %v3918_v49, %v3917_v50 }
 0x4c1   : > { %v3921_v53 = vpop.permute.xlu0 %3920 }
 0x4c2   : > { %v3923_v54 = vunpack.i.h.bf16 %v3921_v53  ;;  %v3922_v55 = vunpack.i.l.bf16 %v3921_v53  ;;  %3697 = vmatprep.subr.msk.bf16.mxu1 %vm4476_vm4, %v3695_v52 }
 0x4c3   : > { %3700 = vmatpush3.bf16.xpose.msk.msra.mxu1 %vm4476_vm4, %v3695_v52 }
 0x4c4   : > { %v3701_v56 = vpack.c.bf16 %v3923_v54, %v3922_v55 }
 0x4c6   : > { %3703 = vmatprep.subr.msk.bf16.mxu0 %vm4476_vm4, %v3701_v56 }
 0x4c7   : > { %3706 = vmatpush3.bf16.xpose.msk.msra.mxu0 %vm4476_vm4, %v3701_v56 }
 0x4ca   : > { %3522 = vmatmul.mubr.msk.f32.vlgmr.msra.gmra.mrb[4].mxu1 %vm958_vm3, %v4488_v57 }
 0x4ce   : > { %3529 = vmatmul.mubr.msk.f32.vlgmr.msra.gmra.mrb[0].mxu0 %vm958_vm3, %v4492_v58 }
 0x59d   : > { %v3523_v4 = vpop.f32.mrb[4].mxu1 }
 0x59e   : > { %v1035_v6 = vpop.f32.mrb[5].mxu1  ;;  %v1041_v9 = vadd.f32 %v3523_v4, %v4501_v63 }
 0x59f   : > { %v1036_v7 = vadd.f32 %v1035_v6, %v4498_v61 }
 0x5a0   : > { %v1139_v14 = vsel %vm1135_vm5, %v1041_v9, -inf }
 0x5a1   : > { %v3530_v1 = vpop.f32.mrb[0].mxu0  ;;  %v1136_v12 = vsel %vm1135_vm5, %v1036_v7, -inf }
 0x5a2   : > { %v1126_v13 = vpop.f32.mrb[1].mxu0  ;;  %1137 = vmax.xlane.f32.xlu1 %v1136_v12  ;;  %v1132_v10 = vadd.f32 %v3530_v1, %v4508_v0 }
 0x5a3   : > { %v1127_v2 = vadd.f32 %v1126_v13, %v4505_v8 }
 0x5a4   : > { %v1145_v15 = vsel %vm1135_vm5, %v1132_v10, -inf }
 0x5a5   : > { %v1142_v3 = vsel %vm1135_vm5, %v1127_v2, -inf }
 0x5a6   : > { %1143 = vmax.xlane.f32.xlu0 %v1142_v3  ;;  %1140 = vmax.xlane.f32.xlu1 %v1139_v14 }
 0x5aa   : > { %1146 = vmax.xlane.f32.xlu1 %v1145_v15 }
 0x5bb   : > { %3925 = vrot.lane.b32.xlu1 %v4460_v41, %s4195_s18 }
 0x5bc   : > { %3930 = vrot.lane.b32.xlu0 %v4467_v46, %s4195_s18 }
 0x5bf   : > { %3935 = vrot.lane.b32.xlu1 %v4460_v41, %s4196_s21 }
 0x5c0   : > { %1445 = vrot.lane.b32.xlu0 %v4469_v47, %s4197_s24 }
 0x5c3   : > { %3940 = vrot.lane.b32.xlu1 %v4467_v46, %s4196_s21 }
 0x5c7   : > { %1354 = vrot.lane.b32.xlu1 %v4462_v42, %s4197_s24 }
 0x5cb   : > { %1356 = vrot.lane.b32.xlu1 %v4488_v57, %s4197_s24 }
 0x62f   : > { %v1138_v16 = vpop.xlane.xlu1 %1137 }
 0x630   : > { %v1148_v19 = vsub.f32 %v1036_v7, %v1138_v16 }
 0x632   : > { %v1152_v26 = vmul.f32 1.442695, %v1148_v19 }
 0x633   : > { %v1144_v11 = vpop.xlane.xlu0 %1143  ;;  %v1141_v20 = vpop.xlane.xlu1 %1140 }
 0x634   : > { %v1149_v21 = vsub.f32 %v1041_v9, %v1141_v20  ;;  %v1150_v30 = vsub.f32 %v1127_v2, %v1144_v11 }
 0x636   : > { %v1154_v18 = vmul.f32 1.442695, %v1149_v21  ;;  %v1156_v39 = vmul.f32 1.442695, %v1150_v30 }
 0x637   : > { %v1147_v27 = vpop.xlane.xlu1 %1146  ;;  %v3931_v29 = vpop.permute.xlu0 %3930 }
 0x638   : > { %v1151_v28 = vsub.f32 %v1132_v10, %v1147_v27  ;;  %4004 = vpow2.f32 %v1154_v18  ;;  %v3933_v34 = vunpack.i.h.bf16 %v3931_v29  ;;  %v3932_v35 = vunpack.i.l.bf16 %v3931_v29 }
 0x639   : > { %4006 = vpow2.f32 %v1152_v26 }
 0x63a   : > { %v1158_v31 = vmul.f32 1.442695, %v1151_v28  ;;  %v3711_v43 = vpack.c.bf16 %v3933_v34, %v3932_v35 }
 0x63b   : > { %v3926_v33 = vpop.permute.xlu1 %3925  ;;  %v1446_v20 = vpop.permute.xlu0 %1445 }
 0x63c   : > { %v3928_v36 = vunpack.i.h.bf16 %v3926_v33  ;;  %v3927_v37 = vunpack.i.l.bf16 %v3926_v33  ;;  %4008 = vpow2.f32 %v1158_v31 }
 0x63d   : > { %4010 = vpow2.f32 %v1156_v39 }
 0x63e   : > { %v3707_v38 = vpack.c.bf16 %v3928_v36, %v3927_v37 }
 0x63f   : > { %v3936_v40 = vpop.permute.xlu1 %3935 }
 0x640   : > { %v3938_v44 = vunpack.i.h.bf16 %v3936_v40  ;;  %v3937_v45 = vunpack.i.l.bf16 %v3936_v40  ;;  %3708 = vmatprep.subr.bf16.mxu1 %v3707_v38 }
 0x641   : > { %3710 = vmatpush3.bf16.msra.mxu1 %v3707_v38 }
 0x642   : > { %v3715_v48 = vpack.c.bf16 %v3938_v44, %v3937_v45  ;;  %3712 = vmatprep.subr.bf16.mxu1 %v3711_v43  ;;  %v4005_v49 = vpop.eup %4004 }
 0x643   : > { %v3941_v50 = vpop.permute.xlu1 %3940  ;;  %v1163_v52 = vsel %vm1135_vm5, %v4005_v49, 0.0  ;;  %v4007_v53 = vpop.eup %4006 }
 0x644   : > { %3717 = vmatprep.subr.msk.bf16.mxu0 %vm4476_vm4, %v3715_v48  ;;  %1164 = vadd.xlane.f32.xlu1 %v1163_v52  ;;  %v1160_v55 = vsel %vm1135_vm5, %v4007_v53, 0.0  ;;  %v3943_v13 = vunpack.i.h.bf16 %v3941_v50  ;;  %v3942_v2 = vunpack.i.l.bf16 %v3941_v50 }
 0x645   : > { %3720 = vmatpush3.bf16.xpose.msk.msra.mxu0 %vm4476_vm4, %v3715_v48 }
 0x646   : > { %v4009_v56 = vpop.eup %4008  ;;  %v3721_v14 = vpack.c.bf16 %v3943_v13, %v3942_v2 }
 0x647   : > { %v1355_v54 = vpop.permute.xlu1 %1354  ;;  %v1169_v60 = vsel %vm1135_vm5, %v4009_v56, 0.0  ;;  %v4011_v62 = vpop.eup %4010 }
 0x648   : > { %3549 = vmatprep.mubr.msk.f32.mxu0 %vm958_vm3, %v1355_v54  ;;  %1161 = vadd.xlane.f32.xlu1 %v1160_v55  ;;  %v1166_v4 = vsel %vm1135_vm5, %v4011_v62, 0.0 }
 0x64b   : > { %v1357_v59 = vpop.permute.xlu1 %1356 }
 0x64c   : > { %3550 = vmatmul.mubr.msk.f32.vlgmr.msra.gmra.mrb[2].mxu0 %vm958_vm3, %v1357_v59  ;;  %1170 = vadd.xlane.f32.xlu1 %v1169_v60 }
 0x650   : > { %1167 = vadd.xlane.f32.xlu1 %v1166_v4 }
 0x661   : > { %1447 = vrot.lane.b32.xlu1 %v4492_v58, %s4197_s24 }
 0x6d1   : > { %v1165_v5 = vpop.xlane.xlu1 %1164 }
 0x6d2   : > { %4012 = vrcp.f32 %v1165_v5 }
 0x6d5   : > { %v1162_v6 = vpop.xlane.xlu1 %1161 }
 0x6d6   : > { %4014 = vrcp.f32 %v1162_v6 }
 0x6d9   : > { %v1171_v7 = vpop.xlane.xlu1 %1170 }
 0x6da   : > { %4016 = vrcp.f32 %v1171_v7 }
 0x6dc   : > { %v4013_v1 = vpop.eup %4012 }
 0x6dd   : > { %v1168_v9 = vpop.xlane.xlu1 %1167  ;;  %v1177_v3 = vmul.f32 %v4013_v1, %v4005_v49 }
 0x6de   : > { %4018 = vrcp.f32 %v1168_v9 }
 0x6e0   : > { %v4015_v12 = vpop.eup %4014 }
 0x6e1   : > { %v1176_v10 = vmul.f32 %v4015_v12, %v4007_v53  ;;  %v1448_v21 = vpop.permute.xlu1 %1447 }
 0x6e3   : > { %3535 = vmatprep.mubr.msk.f32.mxu1 %vm1135_vm5, %v1176_v10 }
 0x6e4   : > { %3536 = vmatmul.mubr.msk.f32.vlgmr.msra.gmra.mrb[6].mxu1 %vm1135_vm5, %v1177_v3  ;;  %v4017_v15 = vpop.eup %4016 }
 0x6e5   : > { %3714 = vmatpush3.bf16.msra.mxu1 %v3711_v43  ;;  %v1179_v11 = vmul.f32 %v4017_v15, %v4009_v56 }
 0x6e6   : > { %3723 = vmatprep.subr.msk.bf16.mxu1 %vm4476_vm4, %v3721_v14 }
 0x6e8   : > { %v4019_v16 = vpop.eup %4018 }
 0x6e9   : > { %v1178_v19 = vmul.f32 %v4019_v16, %v4011_v62 }
 0x6eb   : > { %3542 = vmatprep.mubr.msk.f32.mxu1 %vm1135_vm5, %v1178_v19 }
 0x6ec   : > { %3543 = vmatmul.mubr.msk.f32.vlgmr.msra.gmra.mrb[8].mxu1 %vm1135_vm5, %v1179_v11 }
 0x6ed   : > { %3556 = vmatprep.mubr.msk.f32.mxu1 %vm958_vm3, %v1446_v20 }
 0x6ee   : > { %3726 = vmatpush3.bf16.xpose.msk.msra.mxu1 %vm4476_vm4, %v3721_v14 }
 0x6f5   : > { %3557 = vmatmul.mubr.msk.f32.vlgmr.msra.gmra.mrb[10].mxu1 %vm958_vm3, %v1448_v21 }
 0x71f   : > { %v3551_v18 = vpop.f32.mrb[2].mxu0 }
 0x720   : > { %v1442_v26 = vadd.f32 %v3551_v18, %v4501_v63  ;;  %v1436_v27 = vpop.f32.mrb[3].mxu0 }
 0x721   : > { %v1437_v28 = vadd.f32 %v1436_v27, %v4498_v61 }
 0x722   : > { %v1539_v29 = vsel %vm1135_vm5, %v1442_v26, -inf }
 0x723   : > { %1540 = vmax.xlane.f32.xlu1 %v1539_v29  ;;  %v1536_v30 = vsel %vm1135_vm5, %v1437_v28, -inf }
 0x724   : > { %1537 = vmax.xlane.f32.xlu0 %v1536_v30 }
 0x7b0   : > { %v1541_v37 = vpop.xlane.xlu1 %1540 }
 0x7b1   : > { %v1538_v31 = vpop.xlane.xlu0 %1537  ;;  %v1549_v39 = vsub.f32 %v1442_v26, %v1541_v37 }
 0x7b2   : > { %v1548_v33 = vsub.f32 %v1437_v28, %v1538_v31 }
 0x7b3   : > { %v1554_v45 = vmul.f32 1.442695, %v1549_v39 }
 0x7b4   : > { %v1552_v34 = vmul.f32 1.442695, %v1548_v33 }
 0x7b6   : > { %4020 = vpow2.f32 %v1552_v34 }
 0x7b7   : > { %v4552_v35 = vpop.f32.mrb[6].mxu1  ;;  %4022 = vpow2.f32 %v1554_v45 }
 0x7b8   : > { %v4554_v36 = vpop.f32.mrb[7].mxu1 }
 0x7bf   : > { %v4556_v40 = vpop.f32.mrb[8].mxu1 }
 0x7c0   : > { %v4021_v38 = vpop.eup %4020  ;;  %v4558_v43 = vpop.f32.mrb[9].mxu1 }
 0x7c1   : > { %v1560_v44 = vsel %vm1135_vm5, %v4021_v38, 0.0  ;;  %v4023_v55 = vpop.eup %4022 }
 0x7c2   : > { %1561 = vadd.xlane.f32.xlu1 %v1560_v44  ;;  %v1563_v56 = vsel %vm1135_vm5, %v4023_v55, 0.0 }
 0x7c8   : > { %v3558_v48 = vpop.f32.mrb[10].mxu1 }
 0x7c9   : > { %v1527_v49 = vpop.f32.mrb[11].mxu1  ;;  %v1533_v52 = vadd.f32 %v3558_v48, %v4508_v0 }
 0x7ca   : > { %v1528_v50 = vadd.f32 %v1527_v49, %v4505_v8 }
 0x7cb   : > { %v1545_v54 = vsel %vm1135_vm5, %v1533_v52, -inf }
 0x7cc   : > { %v1542_v53 = vsel %vm1135_vm5, %v1528_v50, -inf }
 0x7cd   : > { %1543 = vmax.xlane.f32.xlu0 %v1542_v53 }
 0x7d1   : > { %1546 = vmax.xlane.f32.xlu0 %v1545_v54 }
 0x7d3   : > { %3945 = vrot.lane.b32.xlu1 %v4460_v41, %s4198_s25 }
 0x7d5   : > { %1564 = vadd.xlane.f32.xlu0 %v1563_v56 }
 0x7d7   : > { %3955 = vrot.lane.b32.xlu1 %v4460_v41, %s4199_s26 }
 0x7db   : > { %3960 = vrot.lane.b32.xlu1 %v4467_v46, %s4199_s26 }
 0x7df   : > { %1756 = vrot.lane.b32.xlu1 %v4488_v57, %s4200_s14 }
 0x7eb   : > { %3950 = vrot.lane.b32.xlu0 %v4467_v46, %s4198_s25  ;;  %s4209_s25 = smov [#allocation2]  }
 0x7ec   : > { %s4101_s26 = sshll.u32 %s4209_s25, 4  ;;  %s4102_s26 = int_to_ptr.vmem [resolvable:$false] %s4101_s26 }
 0x84f   : > { %v1562_v59 = vpop.xlane.xlu1 %1561 }
 0x850   : > { %4024 = vrcp.f32 %v1562_v59 }
 0x853   : > { %v3946_v60 = vpop.permute.xlu1 %3945 }
 0x854   : > { %v3948_v62 = vunpack.i.h.bf16 %v3946_v60  ;;  %v3947_v4 = vunpack.i.l.bf16 %v3946_v60 }
 0x856   : > { %v3727_v5 = vpack.c.bf16 %v3948_v62, %v3947_v4 }
 0x857   : > { %v3956_v6 = vpop.permute.xlu1 %3955 }
 0x858   : > { %v3958_v7 = vunpack.i.h.bf16 %v3956_v6  ;;  %v3957_v9 = vunpack.i.l.bf16 %v3956_v6  ;;  %3728 = vmatprep.subr.bf16.mxu0 %v3727_v5 }
 0x859   : > { %3730 = vmatpush3.bf16.msra.mxu0 %v3727_v5 }
 0x85a   : > { %v4025_v1 = vpop.eup %4024  ;;  %v3735_v12 = vpack.c.bf16 %v3958_v7, %v3957_v9  ;;  %v1544_v13 = vpop.xlane.xlu0 %1543 }
 0x85b   : > { %v1576_v2 = vmul.f32 %v4025_v1, %v4021_v38  ;;  %v1550_v10 = vsub.f32 %v1528_v50, %v1544_v13  ;;  %v3961_v11 = vpop.permute.xlu1 %3960 }
 0x85c   : > { %3737 = vmatprep.subr.msk.bf16.mxu0 %vm4476_vm4, %v3735_v12  ;;  %v3963_v21 = vunpack.i.h.bf16 %v3961_v11  ;;  %v3962_v18 = vunpack.i.l.bf16 %v3961_v11 }
 0x85d   : > { %3563 = vmatprep.mubr.msk.f32.mxu0 %vm1135_vm5, %v1576_v2  ;;  %v1556_v3 = vmul.f32 1.442695, %v1550_v10 }
 0x85e   : > { %v1547_v14 = vpop.xlane.xlu0 %1546  ;;  %v3741_v31 = vpack.c.bf16 %v3963_v21, %v3962_v18 }
 0x85f   : > { %4026 = vpow2.f32 %v1556_v3  ;;  %v1551_v15 = vsub.f32 %v1533_v52, %v1547_v14  ;;  %v1757_v39 = vpop.permute.xlu1 %1756 }
 0x861   : > { %v1558_v16 = vmul.f32 1.442695, %v1551_v15 }
 0x862   : > { %v1565_v19 = vpop.xlane.xlu0 %1564 }
 0x863   : > { %4028 = vpow2.f32 %v1558_v16 }
 0x864   : > { %4030 = vrcp.f32 %v1565_v19 }
 0x866   : > { %v3951_v20 = vpop.permute.xlu0 %3950 }
 0x867   : > { %v3953_v26 = vunpack.i.h.bf16 %v3951_v20  ;;  %v3952_v27 = vunpack.i.l.bf16 %v3951_v20 }
 0x869   : > { %v4027_v28 = vpop.eup %4026  ;;  %v3731_v29 = vpack.c.bf16 %v3953_v26, %v3952_v27 }
 0x86a   : > { %v1566_v30 = vsel %vm1135_vm5, %v4027_v28, 0.0 }
 0x86b   : > { %1567 = vadd.xlane.f32.xlu1 %v1566_v30  ;;  %3732 = vmatprep.subr.bf16.mxu1 %v3731_v29 }
 0x86c   : > { %3734 = vmatpush3.bf16.msra.mxu1 %v3731_v29 }
 0x86d   : > { %v4029_v33 = vpop.eup %4028  ;;  %3743 = vmatprep.subr.msk.bf16.mxu1 %vm4476_vm4, %v3741_v31 }
 0x86e   : > { %v4031_v34 = vpop.eup %4030  ;;  %v1569_v37 = vsel %vm1135_vm5, %v4029_v33, 0.0 }
 0x86f   : > { %v1577_v38 = vmul.f32 %v4031_v34, %v4023_v55  ;;  %1570 = vadd.xlane.f32.xlu0 %v1569_v37 }
 0x871   : > { %3564 = vmatmul.mubr.msk.f32.vlgmr.msra.gmra.mrb[4].mxu0 %vm1135_vm5, %v1577_v38 }
 0x872   : > { %3740 = vmatpush3.bf16.xpose.msk.msra.mxu0 %vm4476_vm4, %v3735_v12 }
 0x87c   : > { %1847 = vrot.lane.b32.xlu1 %v4492_v58, %s4200_s14 }
 0x885   : > { %1754 = vrot.lane.b32.xlu0 %v4462_v42, %s4200_s14 }
 0x889   : > { %1845 = vrot.lane.b32.xlu0 %v4469_v47, %s4200_s14  ;;  %s4103_s14 = scalar_lea.vmem %s4102_s26, 1024 }
 0x8f8   : > { %v1568_v44 = vpop.xlane.xlu1 %1567 }
 0x8f9   : > { %4032 = vrcp.f32 %v1568_v44 }
 0x8fc   : > { %v1571_v45 = vpop.xlane.xlu0 %1570  ;;  %v1848_v55 = vpop.permute.xlu1 %1847 }
 0x8fd   : > { %4034 = vrcp.f32 %v1571_v45 }
 0x900   : > { %v1755_v48 = vpop.permute.xlu0 %1754 }
 0x901   : > { %3577 = vmatprep.mubr.msk.f32.mxu0 %vm958_vm3, %v1755_v48 }
 0x902   : > { %3578 = vmatmul.mubr.msk.f32.vlgmr.msra.gmra.mrb[6].mxu0 %vm958_vm3, %v1757_v39 }
 0x903   : > { %v4033_v49 = vpop.eup %4032 }
 0x904   : > { %v1578_v50 = vmul.f32 %v4033_v49, %v4027_v28  ;;  %v1846_v54 = vpop.permute.xlu0 %1845 }
 0x906   : > { %3570 = vmatprep.mubr.msk.f32.mxu1 %vm1135_vm5, %v1578_v50 }
 0x907   : > { %v4035_v52 = vpop.eup %4034 }
 0x908   : > { %v1579_v53 = vmul.f32 %v4035_v52, %v4029_v33 }
 0x90a   : > { %3571 = vmatmul.mubr.msk.f32.vlgmr.msra.gmra.mrb[12].mxu1 %vm1135_vm5, %v1579_v53 }
 0x90b   : > { %3746 = vmatpush3.bf16.xpose.msk.msra.mxu1 %vm4476_vm4, %v3741_v31  ;;  %3584 = vmatprep.mubr.msk.f32.mxu1 %vm958_vm3, %v1846_v54 }
 0x912   : > { %3585 = vmatmul.mubr.msk.f32.vlgmr.msra.gmra.mrb[14].mxu1 %vm958_vm3, %v1848_v55 }
 0x944   : > { %v4596_v56 = vpop.f32.mrb[4].mxu0 }
 0x945   : > { %v4598_v59 = vpop.f32.mrb[5].mxu0 }
 0x9d5   : > { %v3579_v60 = vpop.f32.mrb[6].mxu0 }
 0x9d6   : > { %v1842_v62 = vadd.f32 %v3579_v60, %v4501_v63  ;;  %v1836_v4 = vpop.f32.mrb[7].mxu0 }
 0x9d7   : > { %v1837_v5 = vadd.f32 %v1836_v4, %v4498_v61 }
 0x9d8   : > { %v1939_v6 = vsel %vm1135_vm5, %v1842_v62, -inf }
 0x9d9   : > { %1940 = vmax.xlane.f32.xlu1 %v1939_v6  ;;  %v1936_v7 = vsel %vm1135_vm5, %v1837_v5, -inf }
 0x9da   : > { %1937 = vmax.xlane.f32.xlu0 %v1936_v7 }
 0x9dd   : > { %v4604_v9 = vpop.f32.mrb[12].mxu1 }
 0x9de   : > { %v4606_v1 = vpop.f32.mrb[13].mxu1 }
 0x9e5   : > { %v3586_v12 = vpop.f32.mrb[14].mxu1 }
 0x9e6   : > { %v1927_v13 = vpop.f32.mrb[15].mxu1  ;;  %v1933_v10 = vadd.f32 %v3586_v12, %v4508_v0 }
 0x9e7   : > { %v1928_v2 = vadd.f32 %v1927_v13, %v4505_v8 }
 0x9e8   : > { %v1945_v14 = vsel %vm1135_vm5, %v1933_v10, -inf }
 0x9e9   : > { %v1942_v3 = vsel %vm1135_vm5, %v1928_v2, -inf }
 0x9ea   : > { %1943 = vmax.xlane.f32.xlu0 %v1942_v3 }
 0x9ee   : > { %1946 = vmax.xlane.f32.xlu0 %v1945_v14 }
 0xa66   : > { %v1941_v15 = vpop.xlane.xlu1 %1940 }
 0xa67   : > { %v1949_v16 = vsub.f32 %v1842_v62, %v1941_v15  ;;  %v1938_v19 = vpop.xlane.xlu0 %1937 }
 0xa68   : > { %v1948_v11 = vsub.f32 %v1837_v5, %v1938_v19 }
 0xa69   : > { %v1954_v20 = vmul.f32 1.442695, %v1949_v16 }
 0xa6a   : > { %v1952_v21 = vmul.f32 1.442695, %v1948_v11 }
 0xa6b   : > { %4036 = vpow2.f32 %v1954_v20 }
 0xa6c   : > { %4038 = vpow2.f32 %v1952_v21 }
 0xa75   : > { %v4037_v18 = vpop.eup %4036 }
 0xa76   : > { %v4039_v26 = vpop.eup %4038  ;;  %v1963_v27 = vsel %vm1135_vm5, %v4037_v18, 0.0 }
 0xa77   : > { %1964 = vadd.xlane.f32.xlu0 %v1963_v27  ;;  %v1960_v28 = vsel %vm1135_vm5, %v4039_v26, 0.0  ;;  %v1944_v29 = vpop.xlane.xlu0 %1943 }
 0xa78   : > { %1961 = vadd.xlane.f32.xlu1 %v1960_v28  ;;  %v1950_v34 = vsub.f32 %v1928_v2, %v1944_v29 }
 0xa7a   : > { %v1956_v37 = vmul.f32 1.442695, %v1950_v34 }
 0xa7b   : > { %v1947_v30 = vpop.xlane.xlu0 %1946 }
 0xa7c   : > { %v1951_v31 = vsub.f32 %v1933_v10, %v1947_v30 }
 0xa7e   : > { %v1958_v33 = vmul.f32 1.442695, %v1951_v31 }
 0xa80   : > { %4040 = vpow2.f32 %v1958_v33 }
 0xa81   : > { %4042 = vpow2.f32 %v1956_v37 }
 0xa89   : > { %3965 = vrot.lane.b32.xlu1 %v4460_v41, %s4201_s19 }
 0xa8a   : > { %v4041_v38 = vpop.eup %4040 }
 0xa8b   : > { %v1969_v39 = vsel %vm1135_vm5, %v4041_v38, 0.0  ;;  %v4043_v44 = vpop.eup %4042 }
 0xa8c   : > { %v1966_v45 = vsel %vm1135_vm5, %v4043_v44, 0.0 }
 0xa8d   : > { %3975 = vrot.lane.b32.xlu1 %v4460_v41, %s4202_s20  ;;  %3970 = vrot.lane.b32.xlu0 %v4467_v46, %s4201_s19 }
 0xa91   : > { %3980 = vrot.lane.b32.xlu1 %v4467_v46, %s4202_s20 }
 0xa95   : > { %2156 = vrot.lane.b32.xlu1 %v4488_v57, %s4203_s16 }
 0xaac   : > { %1970 = vadd.xlane.f32.xlu0 %v1969_v39 }
 0xab9   : > { %1967 = vadd.xlane.f32.xlu1 %v1966_v45 }
 0xac2   : > { %2154 = vrot.lane.b32.xlu0 %v4462_v42, %s4203_s16 }
 0xac6   : > { %2245 = vrot.lane.b32.xlu0 %v4469_v47, %s4203_s16 }
 0xaca   : > { %2247 = vrot.lane.b32.xlu1 %v4492_v58, %s4203_s16 }
 0xb04   : > { %v1965_v57 = vpop.xlane.xlu0 %1964 }
 0xb05   : > { %4044 = vrcp.f32 %v1965_v57  ;;  %v1962_v48 = vpop.xlane.xlu1 %1961 }
 0xb06   : > { %4046 = vrcp.f32 %v1962_v48 }
 0xb08   : > { %v3971_v49 = vpop.permute.xlu0 %3970 }
 0xb09   : > { %v3973_v50 = vunpack.i.h.bf16 %v3971_v49  ;;  %v3972_v52 = vunpack.i.l.bf16 %v3971_v49  ;;  %v3966_v53 = vpop.permute.xlu1 %3965 }
 0xb0a   : > { %v3968_v54 = vunpack.i.h.bf16 %v3966_v53  ;;  %v3967_v55 = vunpack.i.l.bf16 %v3966_v53 }
 0xb0b   : > { %v3751_v60 = vpack.c.bf16 %v3973_v50, %v3972_v52 }
 0xb0c   : > { %v3747_v62 = vpack.c.bf16 %v3968_v54, %v3967_v55 }
 0xb0d   : > { %v3976_v4 = vpop.permute.xlu1 %3975  ;;  %3752 = vmatprep.subr.bf16.mxu1 %v3751_v60 }
 0xb0e   : > { %v3978_v5 = vunpack.i.h.bf16 %v3976_v4  ;;  %v3977_v42 = vunpack.i.l.bf16 %v3976_v4  ;;  %3748 = vmatprep.subr.bf16.mxu0 %v3747_v62  ;;  %3754 = vmatpush3.bf16.msra.mxu1 %v3751_v60 }
 0xb0f   : > { %v4045_v47 = vpop.eup %4044  ;;  %3750 = vmatpush3.bf16.msra.mxu0 %v3747_v62 }
 0xb10   : > { %v4047_v58 = vpop.eup %4046  ;;  %v3755_v6 = vpack.c.bf16 %v3978_v5, %v3977_v42  ;;  %v1977_v13 = vmul.f32 %v4045_v47, %v4037_v18 }
 0xb11   : > { %v3981_v7 = vpop.permute.xlu1 %3980  ;;  %v1976_v12 = vmul.f32 %v4047_v58, %v4039_v26 }
 0xb12   : > { %v3983_v2 = vunpack.i.h.bf16 %v3981_v7  ;;  %v3982_v10 = vunpack.i.l.bf16 %v3981_v7  ;;  %3757 = vmatprep.subr.msk.bf16.mxu0 %vm4476_vm4, %v3755_v6 }
 0xb13   : > { %3591 = vmatprep.mubr.msk.f32.mxu0 %vm1135_vm5, %v1976_v12 }
 0xb14   : > { %v3761_v3 = vpack.c.bf16 %v3983_v2, %v3982_v10  ;;  %3592 = vmatmul.mubr.msk.f32.vlgmr.msra.gmra.mrb[8].mxu0 %vm1135_vm5, %v1977_v13  ;;  %v3999_v10 = vpack.i.bf16 %v4444_v25, %v4437_v23 }
 0xb15   : > { %v2157_v16 = vpop.permute.xlu1 %2156 }
 0xb16   : > { %3763 = vmatprep.subr.msk.bf16.mxu1 %vm4476_vm4, %v3761_v3 }
 0xb18   : > { %3760 = vmatpush3.bf16.xpose.msk.msra.mxu0 %vm4476_vm4, %v3755_v6 }
 0xb39   : > { %v1971_v14 = vpop.xlane.xlu0 %1970 }
 0xb3a   : > { %4048 = vrcp.f32 %v1971_v14 }
 0xb3d   : > { %v2155_v15 = vpop.permute.xlu0 %2154 }
 0xb3e   : > { %3605 = vmatprep.mubr.msk.f32.mxu0 %vm958_vm3, %v2155_v15 }
 0xb3f   : > { %3606 = vmatmul.mubr.msk.f32.vlgmr.msra.gmra.mrb[10].mxu0 %vm958_vm3, %v2157_v16 }
 0xb41   : > { %v2246_v26 = vpop.permute.xlu0 %2245 }
 0xb44   : > { %v4049_v11 = vpop.eup %4048 }
 0xb45   : > { %v1979_v18 = vmul.f32 %v4049_v11, %v4041_v38 }
 0xb46   : > { %v1968_v19 = vpop.xlane.xlu1 %1967 }
 0xb47   : > { %4050 = vrcp.f32 %v1968_v19 }
 0xb4a   : > { %v2248_v27 = vpop.permute.xlu1 %2247 }
 0xb51   : > { %v4051_v20 = vpop.eup %4050 }
 0xb52   : > { %v1978_v21 = vmul.f32 %v4051_v20, %v4043_v44 }
 0xb54   : > { %3598 = vmatprep.mubr.msk.f32.mxu1 %vm1135_vm5, %v1978_v21 }
 0xb55   : > { %3599 = vmatmul.mubr.msk.f32.vlgmr.msra.gmra.mrb[16].mxu1 %vm1135_vm5, %v1979_v18 }
 0xb56   : > { %3766 = vmatpush3.bf16.xpose.msk.msra.mxu1 %vm4476_vm4, %v3761_v3  ;;  %3612 = vmatprep.mubr.msk.f32.mxu1 %vm958_vm3, %v2246_v26 }
 0xb5d   : > { %3613 = vmatmul.mubr.msk.f32.vlgmr.msra.gmra.mrb[18].mxu1 %vm958_vm3, %v2248_v27 }
 0xbe7   : > { %v3593_v28 = vpop.f32.mrb[8].mxu0 }
 0xbe8   : > { %v2058_v29 = vpop.f32.mrb[9].mxu0 }
 0xc12   : > { %v3607_v30 = vpop.f32.mrb[10].mxu0 }
 0xc13   : > { %v2242_v31 = vadd.f32 %v3607_v30, %v4501_v63  ;;  %v2236_v33 = vpop.f32.mrb[11].mxu0 }
 0xc14   : > { %v2237_v34 = vadd.f32 %v2236_v33, %v4498_v61 }
 0xc15   : > { %v2339_v37 = vsel %vm1135_vm5, %v2242_v31, -inf }
 0xc16   : > { %2340 = vmax.xlane.f32.xlu1 %v2339_v37  ;;  %v2336_v38 = vsel %vm1135_vm5, %v2237_v34, -inf }
 0xc17   : > { %2337 = vmax.xlane.f32.xlu0 %v2336_v38 }
 0xc28   : > { %v4644_v51 = vpop.f32.mrb[16].mxu1 }
 0xc29   : > { %v4646_v39 = vpop.f32.mrb[17].mxu1 }
 0xc30   : > { %v3614_v44 = vpop.f32.mrb[18].mxu1 }
 0xc31   : > { %v2327_v45 = vpop.f32.mrb[19].mxu1  ;;  %v2333_v48 = vadd.f32 %v3614_v44, %v4508_v0 }
 0xc32   : > { %v2328_v57 = vadd.f32 %v2327_v45, %v4505_v8 }
 0xc33   : > { %v2345_v61 = vsel %vm1135_vm5, %v2333_v48, -inf }
 0xc34   : > { %v2342_v63 = vsel %vm1135_vm5, %v2328_v57, -inf }
 0xc35   : > { %2343 = vmax.xlane.f32.xlu0 %v2342_v63 }
 0xc39   : > { %2346 = vmax.xlane.f32.xlu0 %v2345_v61 }
 0xca3   : > { %v2341_v49 = vpop.xlane.xlu1 %2340 }
 0xca4   : > { %v2349_v50 = vsub.f32 %v2242_v31, %v2341_v49  ;;  %v2338_v52 = vpop.xlane.xlu0 %2337 }
 0xca5   : > { %v2348_v53 = vsub.f32 %v2237_v34, %v2338_v52 }
 0xca6   : > { %v2354_v54 = vmul.f32 1.442695, %v2349_v50 }
 0xca7   : > { %v2352_v55 = vmul.f32 1.442695, %v2348_v53 }
 0xca8   : > { %4052 = vpow2.f32 %v2354_v54 }
 0xca9   : > { %4054 = vpow2.f32 %v2352_v55 }
 0xcb2   : > { %v4053_v60 = vpop.eup %4052 }
 0xcb3   : > { %v4055_v62 = vpop.eup %4054  ;;  %v2363_v8 = vsel %vm1135_vm5, %v4053_v60, 0.0 }
 0xcb4   : > { %2364 = vadd.xlane.f32.xlu0 %v2363_v8  ;;  %v2360_v0 = vsel %vm1135_vm5, %v4055_v62, 0.0 }
 0xcb5   : > { %2361 = vadd.xlane.f32.xlu1 %v2360_v0 }
 0xcc2   : > { %v2344_v4 = vpop.xlane.xlu0 %2343 }
 0xcc3   : > { %v2350_v5 = vsub.f32 %v2328_v57, %v2344_v4 }
 0xcc5   : > { %v2356_v42 = vmul.f32 1.442695, %v2350_v5 }
 0xcc6   : > { %v2347_v47 = vpop.xlane.xlu0 %2346 }
 0xcc7   : > { %4056 = vpow2.f32 %v2356_v42  ;;  %v2351_v58 = vsub.f32 %v2333_v48, %v2347_v47 }
 0xcc9   : > { %v2358_v6 = vmul.f32 1.442695, %v2351_v58 }
 0xccb   : > { %4058 = vpow2.f32 %v2358_v6 }
 0xcd1   : > { %v4057_v7 = vpop.eup %4056 }
 0xcd2   : > { %v2366_v12 = vsel %vm1135_vm5, %v4057_v7, 0.0 }
 0xcd3   : > { %2367 = vadd.xlane.f32.xlu1 %v2366_v12 }
 0xcd5   : > { %v4059_v13 = vpop.eup %4058 }
 0xcd6   : > { %v2369_v2 = vsel %vm1135_vm5, %v4059_v13, 0.0 }
 0xcd7   : > { %2370 = vadd.xlane.f32.xlu0 %v2369_v2 }
 0xce4   : > { %3985 = vrot.lane.b32.xlu1 %v4460_v41, %s4204_s23 }
 0xce8   : > { %3995 = vrot.lane.b32.xlu1 %v3994_v24, %s4205_s10 }
 0xcec   : > { %4000 = vrot.lane.b32.xlu1 %v3999_v10, %s4205_s10 }
 0xced   : > { %3990 = vrot.lane.b32.xlu0 %v4467_v46, %s4204_s23 }
 0xcf0   : > { %2560 = vrot.lane.b32.xlu1 %v4596_v56, %s4206_s11 }
 0xcf1   : > { %2558 = vrot.lane.b32.xlu0 %v4598_v59, %s4206_s11 }
 0xcf4   : > { %2576 = vrot.lane.b32.xlu1 %v3593_v28, %s4207_s22 }
 0xcf5   : > { %2574 = vrot.lane.b32.xlu0 %v2058_v29, %s4207_s22 }
 0xd41   : > { %v2365_v23 = vpop.xlane.xlu0 %2364 }
 0xd42   : > { %v2362_v22 = vpop.xlane.xlu1 %2361 }
 0xd43   : > { %4060 = vrcp.f32 %v2362_v22  ;;  %v4093_v22 = vld [vmem:[%s4370_s12 + $0x8] sm:$0xff] }
 0xd44   : > { %4062 = vrcp.f32 %v2365_v23 }
 0xd4d   : > { %v4061_v17 = vpop.eup %4060 }
 0xd4e   : > { %v2376_v24 = vmul.f32 %v4061_v17, %v4055_v62  ;;  %v4063_v14 = vpop.eup %4062 }
 0xd4f   : > { %v2377_v26 = vmul.f32 %v4063_v14, %v4053_v60  ;;  %v4095_v14 = vld [vmem:[%s4370_s12 + $0x10] sm:$0xff] }
 0xd50   : > { %3619 = vmatprep.mubr.msk.f32.mxu0 %vm1135_vm5, %v2376_v24  ;;  %v4094_v24 = vld [vmem:[%s4370_s12] sm:$0xff] }
 0xd60   : > { %v2368_v25 = vpop.xlane.xlu1 %2367 }
 0xd61   : > { %4064 = vrcp.f32 %v2368_v25 }
 0xd64   : > { %v3986_v41 = vpop.permute.xlu1 %3985  ;;  %v2371_v46 = vpop.xlane.xlu0 %2370 }
 0xd65   : > { %v3988_v56 = vunpack.i.h.bf16 %v3986_v41  ;;  %v3987_v3 = vunpack.i.l.bf16 %v3986_v41  ;;  %4066 = vrcp.f32 %v2371_v46 }
 0xd67   : > { %v3767_v59 = vpack.c.bf16 %v3988_v56, %v3987_v3 }
 0xd68   : > { %v3996_v15 = vpop.permute.xlu1 %3995  ;;  %v3991_v16 = vpop.permute.xlu0 %3990 }
 0xd69   : > { %v3998_v19 = vunpack.i.h.bf16 %v3996_v15  ;;  %v3997_v11 = vunpack.i.l.bf16 %v3996_v15  ;;  %v3993_v20 = vunpack.i.h.bf16 %v3991_v16  ;;  %v3992_v21 = vunpack.i.l.bf16 %v3991_v16  ;;  %3768 = vmatprep.subr.bf16.mxu0 %v3767_v59 }
 0xd6a   : > { %3770 = vmatpush3.bf16.msra.mxu0 %v3767_v59 }
 0xd6b   : > { %v4065_v18 = vpop.eup %4064  ;;  %v3775_v27 = vpack.c.bf16 %v3998_v19, %v3997_v11  ;;  %v3771_v28 = vpack.c.bf16 %v3993_v20, %v3992_v21  ;;  %v4096_v19 = vld [vmem:[%s4370_s12 + $0x18] sm:$0xff] }
 0xd6c   : > { %v4001_v29 = vpop.permute.xlu1 %4000  ;;  %v2378_v30 = vmul.f32 %v4065_v18, %v4057_v7  ;;  %v2559_v61 = vpop.permute.xlu0 %2558  ;;  %v4703_v7 = vld [vmem:[%s4363_s29] sm:$0xff]  ;;  %s3380_s29 = sshll.u32 %s4179_s9, 9  ;;  %s4876_s9 = sand.u32 1, %s4167_s28  }
 0xd6d   : > { %v4003_v31 = vunpack.i.h.bf16 %v4001_v29  ;;  %v4002_v33 = vunpack.i.l.bf16 %v4001_v29  ;;  %3620 = vmatmul.mubr.msk.f32.vlgmr.msra.gmra.mrb[12].mxu0 %vm1135_vm5, %v2377_v26  ;;  %3772 = vmatprep.subr.bf16.mxu1 %v3771_v28  ;;  %s4779_s18 = scalar_lea.hbm %s4875_s15, %s3380_s29  ;;  %s4789_s21 = scalar_lea.sflag [#allocation3], %s4876_s9 }
 0xd6e   : > { %3774 = vmatpush3.bf16.msra.mxu1 %v3771_v28  ;;  %3626 = vmatprep.mubr.msk.f32.mxu1 %vm1135_vm5, %v2378_v30 }
 0xd6f   : > { %v4067_v34 = vpop.eup %4066  ;;  %v3779_v37 = vpack.c.bf16 %v4003_v31, %v4002_v33  ;;  %3776 = vmatprep.subr.bf16.mxu0 %v3775_v27 }
 0xd70   : > { %v2379_v38 = vmul.f32 %v4067_v34, %v4059_v13  ;;  %3778 = vmatpush3.bf16.msra.mxu0 %v3775_v27  ;;  %v2561_v63 = vpop.permute.xlu1 %2560  ;;  %v2575_v50 = vpop.permute.xlu0 %2574 }
 0xd71   : > { %3780 = vmatprep.subr.bf16.mxu0 %v3779_v37 }
 0xd72   : > { %3627 = vmatmul.mubr.msk.f32.vlgmr.msra.gmra.mrb[20].mxu1 %vm1135_vm5, %v2379_v38 }
 0xd74   : > { %3782 = vmatpush3.bf16.msra.mxu0 %v3779_v37  ;;  %v2577_v49 = vpop.permute.xlu1 %2576 }
 0xe40   : > { %v3621_v44 = vpop.f32.mrb[12].mxu0 }
 0xe41   : > { %2592 = vrot.lane.b32.xlu1 %v3621_v44, %s4208_s13  ;;  %v2458_v45 = vpop.f32.mrb[13].mxu0 }
 0xe42   : > { %2590 = vrot.lane.b32.xlu0 %v2458_v45, %s4208_s13 }
 0xe45   : > { %2564 = vrot.lane.b32.xlu1 %v4604_v9, %s4206_s11  ;;  %v3628_v57 = vpop.f32.mrb[20].mxu1  ;;  %v2602_v9 = vsel %vm958_vm3, %v4554_v36, %v2559_v61 }
 0xe46   : > { %2562 = vrot.lane.b32.xlu0 %v4606_v1, %s4206_s11  ;;  %v2545_v48 = vpop.f32.mrb[21].mxu1  ;;  %v2603_v1 = vsel %vm958_vm3, %v4552_v35, %v2561_v63  ;;  %v2606_v53 = vsel %vm1135_vm5, %v2602_v9, %v2575_v50  ;;  %v818_v9 = vld [vmem:[%s4368_s27 + $0x8] sm:$0xff] }
 0xe47   : > { %v2607_v54 = vsel %vm1135_vm5, %v2603_v1, %v2577_v49 }
 0xe49   : > { %2580 = vrot.lane.b32.xlu1 %v4644_v51, %s4207_s22 }
 0xe4a   : > { %2578 = vrot.lane.b32.xlu0 %v4646_v39, %s4207_s22 }
 0xe4d   : > { %2596 = vrot.lane.b32.xlu1 %v3628_v57, %s4208_s13 }
 0xe4e   : > { %2594 = vrot.lane.b32.xlu0 %v2545_v48, %s4208_s13 }
 0xeb3   : > { %v2593_v52 = vpop.permute.xlu1 %2592 }
 0xeb4   : > { %v2591_v51 = vpop.permute.xlu0 %2590  ;;  %v2612_v55 = vsel %vm2610_vm6, %v2607_v54, %v2593_v52  ;;  %v820_v52 = vld [vmem:[%s4368_s27 + $0x18] sm:$0xff] }
 0xeb5   : > { %v2611_v39 = vsel %vm2610_vm6, %v2606_v53, %v2591_v51  ;;  %v3783_v1 = vpack.c.bf16 %v820_v52, %v818_v9  ;;  %v822_v53 = vld [vmem:[%s4368_s27 + $0x28] sm:$0xff]  ;;  %v824_v51 = vld [vmem:[%s4368_s27 + $0x38] sm:$0xff] }
 0xeb6   : > { %3637 = vmatprep.mubr.msk.f32.mxu0 %vm842_vm2, %v2611_v39  ;;  %v3787_v54 = vpack.c.bf16 %v824_v51, %v822_v53 }
 0xeb7   : > { %v2565_v60 = vpop.permute.xlu1 %2564  ;;  %3638 = vmatmul.mubr.msk.f32.vlgmr.msra.gmra.mrb[14].mxu0 %vm842_vm2, %v2612_v55  ;;  %3784 = vmatprep.subr.bf16.mxu1 %v3783_v1 }
 0xeb8   : > { %v2563_v36 = vpop.permute.xlu0 %2562  ;;  %v2605_v4 = vsel %vm958_vm3, %v4556_v40, %v2565_v60  ;;  %3786 = vmatpush3.bf16.msra.mxu1 %v3783_v1 }
 0xeb9   : > { %v2604_v35 = vsel %vm958_vm3, %v4558_v43, %v2563_v36  ;;  %v2617_v43 = vsub.s32 1, %v4456_v32  ;;  %3788 = vmatprep.subr.bf16.mxu1 %v3787_v54 }
 0xebb   : > { %v2581_v62 = vpop.permute.xlu1 %2580  ;;  %v2618_v40 = vrot.slane %v4703_v7, %v2617_v43 }
 0xebc   : > { %v2579_v8 = vpop.permute.xlu0 %2578  ;;  %v2609_v47 = vsel %vm1135_vm5, %v2605_v4, %v2581_v62  ;;  %3790 = vmatpush3.bf16.msra.mxu1 %v3787_v54  ;;  %v2799_v4 = vsub.s32 3, %v4456_v32 }
 0xebd   : > { %v2608_v5 = vsel %vm1135_vm5, %v2604_v35, %v2579_v8  ;;  %v2791_v35 = vsub.s32 2, %v4456_v32 }
 0xebf   : > { %v2597_v0 = vpop.permute.xlu1 %2596 }
 0xec0   : > { %v2595_v42 = vpop.permute.xlu0 %2594  ;;  %v2614_v6 = vsel %vm2610_vm6, %v2609_v47, %v2597_v0 }
 0xec1   : > { %v2613_v58 = vsel %vm2610_vm6, %v2608_v5, %v2595_v42  ;;  %v2792_v42 = vrot.slane %v4703_v7, %v2791_v35 }
 0xec2   : > { %3640 = vmatprep.mubr.msk.f32.mxu0 %vm842_vm2, %v2613_v58 }
 0xec3   : > { %3641 = vmatmul.mubr.msk.f32.gmra.mrb[16].mxu0 %vm842_vm2, %v2614_v6 }
 0xf8a   : > { %v3639_v12 = vpop.f32.mrb[14].mxu0 }
 0xf8b   : > { %v2719_v13 = vadd.f32 %v3639_v12, %v2618_v40  ;;  %v2713_v2 = vpop.f32.mrb[15].mxu0 }
 0xf8c   : > { %v2714_v10 = vadd.f32 %v2713_v2, %v2618_v40 }
 0xf8d   : > { %v2733_v17 = vadd.f32 %v4093_v22, %v2719_v13  ;;  %v2800_v13 = vrot.slane %v4703_v7, %v2799_v4 }
 0xf8e   : > { %v2732_v23 = vadd.f32 %v4094_v24, %v2714_v10 }
 0xf8f   : > { %v2739_v25 = vsel %vm842_vm2, %v2733_v17, 0.0 }
 0xf90   : > { %2740 = vadd.xlane.f32.xlu1 %v2739_v25  ;;  %v2736_v41 = vsel %vm842_vm2, %v2732_v23, 0.0 }
 0xf91   : > { %2737 = vadd.xlane.f32.xlu0 %v2736_v41 }
 0xf96   : > { %v3642_v46 = vpop.f32.mrb[16].mxu0 }
 0xf97   : > { %v2723_v56 = vpop.f32.mrb[17].mxu0  ;;  %v2729_v3 = vadd.f32 %v3642_v46, %v2618_v40 }
 0xf98   : > { %v2724_v59 = vadd.f32 %v2723_v56, %v2618_v40 }
 0xf99   : > { %v2735_v11 = vadd.f32 %v4096_v19, %v2729_v3  ;;  %v826_v19 = vld [vmem:[%s4368_s27 + $0x50] sm:$0xff] }
 0xf9a   : > { %v2734_v15 = vadd.f32 %v4095_v14, %v2724_v59 }
 0xf9b   : > { %v2745_v20 = vsel %vm842_vm2, %v2735_v11, 0.0 }
 0xf9c   : > { %v2742_v16 = vsel %vm842_vm2, %v2734_v15, 0.0 }
 0xf9d   : > { %2743 = vadd.xlane.f32.xlu0 %v2742_v16  ;;  %v825_v16 = vld [vmem:[%s4368_s27 + $0x40] sm:$0xff] }
 0xfa1   : > { %2746 = vadd.xlane.f32.xlu0 %v2745_v20  ;;  %v827_v20 = vld [vmem:[%s4368_s27 + $0x60] sm:$0xff] }
0x101d   : > { %v2741_v21 = vpop.xlane.xlu1 %2740 }
0x101e   : > { %v2750_v18 = vmul.f32 0.03125, %v2741_v21  ;;  %v2738_v26 = vpop.xlane.xlu0 %2737  ;;  %v828_v21 = vld [vmem:[%s4368_s27 + $0x70] sm:$0xff] }
0x101f   : > { %v2749_v27 = vmul.f32 0.03125, %v2738_v26  ;;  %v829_v26 = vld [vmem:[%s4368_s27 + $0x80] sm:$0xff] }
0x1020   : > { %v2754_v28 = vsub.f32 %v2733_v17, %v2750_v18  ;;  %v3795_v18 = vpack.c.bf16 %v828_v21, %v827_v20 }
0x1021   : > { %v2753_v29 = vsub.f32 %v2732_v23, %v2749_v27  ;;  %v830_v27 = vld [vmem:[%s4368_s27 + $0x90] sm:$0xff] }
0x1022   : > { %v2758_v30 = vmul.f32 %v2754_v28, %v2754_v28 }
0x1023   : > { %v2757_v31 = vmul.f32 %v2753_v29, %v2753_v29 }
0x1024   : > { %v2764_v33 = vsel %vm842_vm2, %v2758_v30, 0.0  ;;  %v832_v30 = vld [vmem:[%s4368_s27 + $0xb0] sm:$0xff] }
0x1025   : > { %2765 = vadd.xlane.f32.xlu0 %v2764_v33  ;;  %v2761_v34 = vsel %vm842_vm2, %v2757_v31, 0.0  ;;  %v2807_v33 = vsub.s32 4, %v4456_v32 }
0x1026   : > { %2762 = vadd.xlane.f32.xlu1 %v2761_v34 }
0x1027   : > { %v2808_v34 = vrot.slane %v4703_v7, %v2807_v33 }
0x102a   : > { %v2744_v37 = vpop.xlane.xlu0 %2743 }
0x102b   : > { %v2751_v38 = vmul.f32 0.03125, %v2744_v37 }
0x102d   : > { %v2755_v44 = vsub.f32 %v2734_v15, %v2751_v38 }
0x102e   : > { %v2747_v45 = vpop.xlane.xlu0 %2746 }
0x102f   : > { %v2752_v57 = vmul.f32 0.03125, %v2747_v45  ;;  %v2759_v48 = vmul.f32 %v2755_v44, %v2755_v44 }
0x1031   : > { %v2756_v63 = vsub.f32 %v2735_v11, %v2752_v57  ;;  %v2767_v61 = vsel %vm842_vm2, %v2759_v48, 0.0  ;;  %v3791_v11 = vpack.c.bf16 %v826_v19, %v825_v16  ;;  %v2944_v16 = vsub.s32 5, %v4456_v32 }
0x1032   : > { %2768 = vadd.xlane.f32.xlu1 %v2767_v61 }
0x1033   : > { %v2760_v49 = vmul.f32 %v2756_v63, %v2756_v63  ;;  %3792 = vmatprep.subr.bf16.mxu0 %v3791_v11  ;;  %v2945_v19 = vrot.slane %v4703_v7, %v2944_v16 }
0x1034   : > { %3794 = vmatpush3.bf16.msra.mxu0 %v3791_v11 }
0x1035   : > { %v2770_v50 = vsel %vm842_vm2, %v2760_v49, 0.0  ;;  %3796 = vmatprep.subr.bf16.mxu0 %v3795_v18 }
0x1036   : > { %2771 = vadd.xlane.f32.xlu0 %v2770_v50 }
0x1038   : > { %3798 = vmatpush3.bf16.msra.mxu0 %v3795_v18 }
0x10b2   : > { %v2766_v39 = vpop.xlane.xlu0 %2765 }
0x10b3   : > { %v2774_v55 = vmul.f32 0.03125, %v2766_v39  ;;  %v2763_v60 = vpop.xlane.xlu1 %2762 }
0x10b4   : > { %v2773_v36 = vmul.f32 0.03125, %v2763_v60 }
0x10b5   : > { %v2778_v62 = vadd.f32 1e-05, %v2774_v55 }
0x10b6   : > { %v2777_v8 = vadd.f32 1e-05, %v2773_v36 }
0x10b7   : > { %4068 = vrsqrt.f32 %v2778_v62 }
0x10b8   : > { %4070 = vrsqrt.f32 %v2777_v8 }
0x10bf   : > { %v2769_v0 = vpop.xlane.xlu1 %2768 }
0x10c0   : > { %v2775_v5 = vmul.f32 0.03125, %v2769_v0 }
0x10c1   : > { %v4069_v47 = vpop.eup %4068 }
0x10c2   : > { %v4071_v58 = vpop.eup %4070  ;;  %v2786_v6 = vmul.f32 %v4069_v47, %v2754_v28  ;;  %v2779_v43 = vadd.f32 1e-05, %v2775_v5  ;;  %v3799_v28 = vpack.c.bf16 %v830_v27, %v829_v26 }
0x10c3   : > { %v2772_v40 = vpop.xlane.xlu0 %2771  ;;  %v2785_v12 = vmul.f32 %v4071_v58, %v2753_v29  ;;  %v831_v29 = vld [vmem:[%s4368_s27 + $0xa0] sm:$0xff]  ;;  %s3135_s27 = sshll.u32 %s4370_s12, 4  ;;  %s4781_s27 = int_to_ptr.vmem [resolvable:$true] %s3135_s27 }
0x10c4   : > { %4072 = vrsqrt.f32 %v2779_v43  ;;  %v2776_v2 = vmul.f32 0.03125, %v2772_v40  ;;  %v2794_v10 = vmul.f32 %v2792_v42, %v2786_v6  ;;  %3800 = vmatprep.subr.bf16.mxu0 %v3799_v28  ;;  %v3803_v31 = vpack.c.bf16 %v832_v30, %v831_v29  ;;  %s4097_s24 = scalar_lea.vmem %s4781_s27, 512  ;;  %p4104_p5 = scmp.lt.s32.totalorder %s4781_s27, %s4102_s26 }
0x10c5   : > { %v2793_v22 = vmul.f32 %v2792_v42, %v2785_v12  ;;  %3802 = vmatpush3.bf16.msra.mxu0 %v3799_v28  ;;  %p4098_p1 = scmp.ne.s32.totalorder %s4781_s27, %s4097_s24  ;;  %p4105_p6 = scmp.lt.s32.totalorder %s4103_s14, %s4097_s24 }
0x10c6   : > { %v2780_v17 = vadd.f32 1e-05, %v2776_v2  ;;  %v4728_v23 = vadd.f32 %v2800_v13, %v2794_v10  ;;  %3804 = vmatprep.subr.bf16.mxu0 %v3803_v31 }
0x10c7   : > { %v4726_v24 = vadd.f32 %v2800_v13, %v2793_v22  ;;  %p4099_p2 = pnand %p4098_p1, %p4305_p3  ;;  %p4106_p7 = por %p4105_p6, %p4104_p5 }
0x10c8   : > { %4074 = vrsqrt.f32 %v2780_v17 }
0x10c9   : > { %3651 = vmatprep.mubr.msk.f32.mxu1 %vm842_vm2, %v4726_v24  ;;  %3806 = vmatpush3.bf16.msra.mxu0 %v3803_v31  ;;  %p4100_p4 = pneg %p4099_p2 }
0x10ca   : > { %3652 = vmatmul.mubr.msk.f32.vlgmr.msra.gmra.mrb[22].mxu1 %vm842_vm2, %v4728_v23 }
0x10cb   : > { %p4107_p8 = pnand %p4106_p7, %p4100_p4 }
0x10ce   : > { %v4073_v25 = vpop.eup %4072 }
0x10cf   : > { %v2787_v41 = vmul.f32 %v4073_v25, %v2755_v44 }
0x10d1   : > { %v2795_v46 = vmul.f32 %v2792_v42, %v2787_v41 }
0x10d2   : > { %v4075_v56 = vpop.eup %4074 }
0x10d3   : > { %v4734_v3 = vadd.f32 %v2800_v13, %v2795_v46  ;;  %v2788_v59 = vmul.f32 %v4075_v56, %v2756_v63 }
0x10d5   : > { %3654 = vmatprep.mubr.msk.f32.mxu1 %vm842_vm2, %v4734_v3  ;;  %v2796_v14 = vmul.f32 %v2792_v42, %v2788_v59 }
0x10d7   : > { %v4738_v15 = vadd.f32 %v2800_v13, %v2796_v14 }
0x10d9   : > { %3655 = vmatmul.mubr.msk.f32.gmra.mrb[24].mxu1 %vm842_vm2, %v4738_v15 }
0x119d   : > { %v3653_v37 = vpop.f32.mrb[22].mxu1 }
0x119e   : > { %v2893_v38 = vadd.f32 %v3653_v37, %v2808_v34  ;;  %v2887_v44 = vpop.f32.mrb[23].mxu1 }
0x119f   : > { %v2888_v45 = vadd.f32 %v2887_v44, %v2808_v34 }
0x11a0   : > { %v2907_v57 = vmul.f32 %v2893_v38, %v2893_v38 }
0x11a1   : > { %v2906_v48 = vmul.f32 %v2888_v45, %v2888_v45 }
0x11a2   : > { %v2911_v63 = vmul.f32 %v2907_v57, %v2893_v38 }
0x11a3   : > { %v2910_v61 = vmul.f32 %v2906_v48, %v2888_v45 }
0x11a4   : > { %v2915_v49 = vmul.f32 0.044715, %v2911_v63 }
0x11a5   : > { %v2914_v50 = vmul.f32 0.044715, %v2910_v61 }
0x11a6   : > { %v2919_v9 = vadd.f32 %v2915_v49, %v2893_v38 }
0x11a7   : > { %v2918_v52 = vadd.f32 %v2914_v50, %v2888_v45 }
0x11a8   : > { %v2923_v1 = vmul.f32 0.7978846, %v2919_v9 }
0x11a9   : > { %v2922_v53 = vmul.f32 0.7978846, %v2918_v52 }
0x11aa   : > { %4076 = vtanh.f32 %v2923_v1 }
0x11ab   : > { %4078 = vtanh.f32 %v2922_v53 }
0x11ac   : > { %v3656_v51 = vpop.f32.mrb[24].mxu1 }
0x11ad   : > { %v2903_v54 = vadd.f32 %v3656_v51, %v2808_v34  ;;  %v2897_v39 = vpop.f32.mrb[25].mxu1 }
0x11ae   : > { %v2898_v55 = vadd.f32 %v2897_v39, %v2808_v34 }
0x11af   : > { %v2909_v60 = vmul.f32 %v2903_v54, %v2903_v54 }
0x11b0   : > { %v2908_v36 = vmul.f32 %v2898_v55, %v2898_v55 }
0x11b1   : > { %v2913_v62 = vmul.f32 %v2909_v60, %v2903_v54 }
0x11b2   : > { %v2912_v8 = vmul.f32 %v2908_v36, %v2898_v55 }
0x11b3   : > { %v2917_v35 = vmul.f32 0.044715, %v2913_v62 }
0x11b4   : > { %v4077_v0 = vpop.eup %4076  ;;  %v2916_v4 = vmul.f32 0.044715, %v2912_v8 }
0x11b5   : > { %v4079_v5 = vpop.eup %4078  ;;  %v2931_v42 = vadd.f32 1.0, %v4077_v0  ;;  %v2921_v47 = vadd.f32 %v2917_v35, %v2903_v54 }
0x11b6   : > { %v2920_v58 = vadd.f32 %v2916_v4, %v2898_v55  ;;  %v2930_v6 = vadd.f32 1.0, %v4079_v5 }
0x11b7   : > { %v2935_v43 = vmul.f32 0.5, %v2931_v42  ;;  %v2925_v40 = vmul.f32 0.7978846, %v2921_v47  ;;  %v3102_v42 = vsub.s32 6, %v4456_v32  ;;  %v3110_v47 = vsub.s32 7, %v4456_v32 }
0x11b8   : > { %v2924_v12 = vmul.f32 0.7978846, %v2920_v58  ;;  %v2934_v13 = vmul.f32 0.5, %v2930_v6 }
0x11b9   : > { %4080 = vtanh.f32 %v2925_v40  ;;  %v2939_v10 = vmul.f32 %v2935_v43, %v2893_v38  ;;  %v3103_v58 = vrot.slane %v4703_v7, %v3102_v42 }
0x11ba   : > { %4082 = vtanh.f32 %v2924_v12  ;;  %v2938_v2 = vmul.f32 %v2934_v13, %v2888_v45  ;;  %v3111_v12 = vrot.slane %v4703_v7, %v3110_v47 }
0x11bc   : > { %3673 = vmatprep.mubr.msk.f32.mxu0 %vm2946_vm7, %v2938_v2 }
0x11bd   : > { %3674 = vmatmul.mubr.msk.f32.vlgmr.msra.gmra.mrb[18].mxu0 %vm2946_vm7, %v2939_v10 }
0x11c3   : > { %v4081_v22 = vpop.eup %4080 }
0x11c4   : > { %v4083_v17 = vpop.eup %4082  ;;  %v2933_v25 = vadd.f32 1.0, %v4081_v22 }
0x11c5   : > { %v2932_v41 = vadd.f32 1.0, %v4083_v17 }
0x11c6   : > { %v2937_v46 = vmul.f32 0.5, %v2933_v25 }
0x11c7   : > { %v2936_v56 = vmul.f32 0.5, %v2932_v41 }
0x11c8   : > { %v2941_v14 = vmul.f32 %v2937_v46, %v2903_v54 }
0x11c9   : > { %v2940_v59 = vmul.f32 %v2936_v56, %v2898_v55 }
0x11cb   : > { %3676 = vmatprep.mubr.msk.f32.mxu0 %vm2946_vm7, %v2940_v59 }
0x11cc   : > { %3677 = vmatmul.mubr.msk.f32.gmra.mrb[20].mxu0 %vm2946_vm7, %v2941_v14 }
0x1290   : > { %v3675_v11 = vpop.f32.mrb[18].mxu0 }
0x1291   : > { %v3031_v20 = vadd.f32 %v3675_v11, %v2945_v19  ;;  %v3025_v21 = vpop.f32.mrb[19].mxu0 }
0x1292   : > { %v3026_v18 = vadd.f32 %v3025_v21, %v2945_v19 }
0x1293   : > { %v3045_v26 = vadd.f32 %v3031_v20, %v4728_v23 }
0x1294   : > { %v3044_v27 = vadd.f32 %v3026_v18, %v4726_v24 }
0x1295   : > { %v3051_v28 = vsel %vm842_vm2, %v3045_v26, 0.0 }
0x1296   : > { %3052 = vadd.xlane.f32.xlu0 %v3051_v28  ;;  %v3048_v29 = vsel %vm842_vm2, %v3044_v27, 0.0 }
0x1297   : > { %3049 = vadd.xlane.f32.xlu1 %v3048_v29 }
0x129f   : > { %v3678_v30 = vpop.f32.mrb[20].mxu0 }
0x12a0   : > { %v3041_v31 = vadd.f32 %v3678_v30, %v2945_v19  ;;  %v3035_v33 = vpop.f32.mrb[21].mxu0 }
0x12a1   : > { %v3036_v34 = vadd.f32 %v3035_v33, %v2945_v19 }
0x12a2   : > { %v3047_v37 = vadd.f32 %v3041_v31, %v4738_v15 }
0x12a3   : > { %v3046_v38 = vadd.f32 %v3036_v34, %v4734_v3 }
0x12a4   : > { %v3057_v44 = vsel %vm842_vm2, %v3047_v37, 0.0 }
0x12a5   : > { %3058 = vadd.xlane.f32.xlu0 %v3057_v44  ;;  %v3054_v23 = vsel %vm842_vm2, %v3046_v38, 0.0 }
0x12a6   : > { %3055 = vadd.xlane.f32.xlu1 %v3054_v23 }
0x1323   : > { %v3053_v24 = vpop.xlane.xlu0 %3052 }
0x1324   : > { %v3061_v45 = vmul.f32 0.03125, %v3053_v24  ;;  %v3050_v57 = vpop.xlane.xlu1 %3049 }
0x1325   : > { %v3060_v48 = vmul.f32 0.03125, %v3050_v57 }
0x1326   : > { %v3065_v63 = vsub.f32 %v3045_v26, %v3061_v45 }
0x1327   : > { %v3064_v61 = vsub.f32 %v3044_v27, %v3060_v48 }
0x1328   : > { %v3069_v49 = vmul.f32 %v3065_v63, %v3065_v63 }
0x1329   : > { %v3068_v50 = vmul.f32 %v3064_v61, %v3064_v61 }
0x132a   : > { %v3075_v9 = vsel %vm842_vm2, %v3069_v49, 0.0 }
0x132b   : > { %3076 = vadd.xlane.f32.xlu0 %v3075_v9  ;;  %v3072_v15 = vsel %vm842_vm2, %v3068_v50, 0.0 }
0x132c   : > { %3073 = vadd.xlane.f32.xlu1 %v3072_v15 }
0x1332   : > { %v3059_v3 = vpop.xlane.xlu0 %3058 }
0x1333   : > { %v3063_v52 = vmul.f32 0.03125, %v3059_v3  ;;  %v3056_v1 = vpop.xlane.xlu1 %3055 }
0x1334   : > { %v3062_v53 = vmul.f32 0.03125, %v3056_v1 }
0x1335   : > { %v3067_v51 = vsub.f32 %v3047_v37, %v3063_v52 }
0x1336   : > { %v3066_v54 = vsub.f32 %v3046_v38, %v3062_v53 }
0x1337   : > { %v3071_v39 = vmul.f32 %v3067_v51, %v3067_v51 }
0x1338   : > { %v3070_v55 = vmul.f32 %v3066_v54, %v3066_v54 }
0x1339   : > { %v3081_v60 = vsel %vm842_vm2, %v3071_v39, 0.0 }
0x133a   : > { %3082 = vadd.xlane.f32.xlu0 %v3081_v60  ;;  %v3078_v36 = vsel %vm842_vm2, %v3070_v55, 0.0 }
0x133b   : > { %3079 = vadd.xlane.f32.xlu1 %v3078_v36 }
0x13b8   : > { %v3077_v62 = vpop.xlane.xlu0 %3076 }
0x13b9   : > { %v3085_v8 = vmul.f32 0.03125, %v3077_v62  ;;  %v3074_v35 = vpop.xlane.xlu1 %3073 }
0x13ba   : > { %v3084_v0 = vmul.f32 0.03125, %v3074_v35 }
0x13bb   : > { %v3089_v4 = vadd.f32 1e-05, %v3085_v8 }
0x13bc   : > { %v3088_v5 = vadd.f32 1e-05, %v3084_v0 }
0x13bd   : > { %4084 = vrsqrt.f32 %v3089_v4 }
0x13be   : > { %4086 = vrsqrt.f32 %v3088_v5 }
0x13c7   : > { %v4085_v6 = vpop.eup %4084  ;;  %v3083_v43 = vpop.xlane.xlu0 %3082 }
0x13c8   : > { %v4087_v40 = vpop.eup %4086  ;;  %v3097_v13 = vmul.f32 %v4085_v6, %v3065_v63  ;;  %v3087_v2 = vmul.f32 0.03125, %v3083_v43  ;;  %v3080_v10 = vpop.xlane.xlu1 %3079 }
0x13c9   : > { %v3096_v22 = vmul.f32 %v4087_v40, %v3064_v61  ;;  %v3086_v17 = vmul.f32 0.03125, %v3080_v10 }
0x13ca   : > { %v3105_v25 = vmul.f32 %v3103_v58, %v3097_v13  ;;  %v3091_v41 = vadd.f32 1e-05, %v3087_v2 }
0x13cb   : > { %v3104_v46 = vmul.f32 %v3103_v58, %v3096_v22  ;;  %v3090_v32 = vadd.f32 1e-05, %v3086_v17 }
0x13cc   : > { %v3113_v56 = vadd.f32 %v3111_v12, %v3105_v25  ;;  %4088 = vrsqrt.f32 %v3091_v41 }
0x13cd   : > { %v3112_v59 = vadd.f32 %v3111_v12, %v3104_v46  ;;  %4090 = vrsqrt.f32 %v3090_v32 }
0x13ce   : > { %3117 = vst.msk [vmem:[%s4370_s12 + $0x8] sm:$0xff] %vm842_vm2, %v3113_v56 }
0x13cf   : > { %3116 = vst.msk [vmem:[%s4370_s12] sm:$0xff] %vm842_vm2, %v3112_v59 }
0x13d6   : > { %v4089_v7 = vpop.eup %4088 }
0x13d7   : > { %v4091_v14 = vpop.eup %4090  ;;  %v3099_v16 = vmul.f32 %v4089_v7, %v3067_v51 }
0x13d8   : > { %v3098_v19 = vmul.f32 %v4091_v14, %v3066_v54 }
0x13d9   : > { %v3107_v11 = vmul.f32 %v3103_v58, %v3099_v16 }
0x13da   : > { %v3106_v20 = vmul.f32 %v3103_v58, %v3098_v19 }
0x13db   : > { %v3115_v21 = vadd.f32 %v3111_v12, %v3107_v11 }
0x13dc   : > { %v3114_v18 = vadd.f32 %v3111_v12, %v3106_v20 }
0x13dd   : > { %3119 = vst.msk [vmem:[%s4370_s12 + $0x18] sm:$0xff] %vm842_vm2, %v3115_v21 }
0x13de   : > { %3118 = vst.msk [vmem:[%s4370_s12 + $0x10] sm:$0xff] %vm842_vm2, %v3114_v18 }
0x13df   : > { %4110 = shalt.err (!%p4107_p8)
}
0x13e0   : > { %s4111_s12 = scalar_lea.hbm %s4779_s18, 512  ;;  %s4115_s16 = scalar_lea.hbm %s4875_s15, 1024 }
0x13e1   : > { %p4112_p10 = scmp.ne.s32.totalorder %s4779_s18, %s4111_s12  ;;  %p4116_p13 = scmp.lt.u32.totalorder %s4779_s18, %s4875_s15 }
0x13e2   : > { %p4117_p0 = scmp.lt.u32.totalorder %s4115_s16, %s4111_s12  ;;  %p4119_p2 = scmp.lt.u32.totalorder %s4111_s12, %s4779_s18 }
0x13e3   : > { %p4113_p11 = pnand %p4112_p10, %p4305_p3 }
0x13e4   : > { %p4118_p1 = por %p4117_p0, %p4116_p13 }
0x13e5   : > { %p4114_p12 = pneg %p4113_p11 }
0x13e6   : > { %p4120_p4 = por %p4119_p2, %p4118_p1 }
0x13e8   : > { %p4121_p5 = pnand %p4120_p4, %p4114_p12 }
0x13ea   : > { %4124 = shalt.err (!%p4121_p5)
}
0x13eb   : > { %s4210_s22 = smov 128  }
0x13ec   : > { %3808 = dma.vmem_to_hbm [thread:$0]  (%p4305_p3), %s4781_s27, 512, %s4779_s18, %s4789_s21, %s4210_s22, %s4210_s22, %s4206_s11  }
0x13ed PF: > { %s4877_s13 = sld [smem:[#allocation9_spill]]  ;;  %s4878_s29 = sld [smem:[#allocation5_spill]] }
0x13f3   : > { %p3814_p6 = scmp.ge.s32.totalorder %s4877_s13, 2  ;;  %s3150_s30 = sand.u32 1, %s4878_s29  }
0x13f4   : > { %s3151_s9 = scalar_lea.sflag [#allocation3], %s3150_s30 }
0x13f5   : > { %p3811_p7 = pnand %p3814_p6, %p4315_p9 }
0x13f7   : > { %4158 = dma.done.wait (!%p3811_p7), %s3151_s9, 512  }
0x13f8   : > { %4160 = vsyncadd (!%p3811_p7), %s3151_s9, 4294966784  ;;  %s21_s12 = sadd.s32 1, %s4877_s13   ;;  %s4880_s17 = sld [smem:[#allocation6_spill]] }
0x13f9   : > { %p18_p8 = scmp.ge.s32.totalorder %s21_s12, 6   ;;  %s4881_s29 = sld [smem:[#allocation13_spill]] }
0x13fa   : > { %s4882_s30 = sld [smem:[#allocation7_spill]]  ;;  %s4883_s9 = sld [smem:[#allocation8_spill]] }
0x13fb   : > { %s4884_s10 = sld [smem:[#allocation10_spill]]  ;;  %s4885_s11 = sld [smem:[#allocation11_spill]] }
0x13fc   : > { %s4886_s27 = smov %s4167_s28  ;;  %20 = sbr.rel (!%p18_p8) target bundleno = 7 (0x7), region = 109 }
0x13fe   : > { %s4887_s28 = smov %s4880_s17 }
0x1403   :  { %3156 = vsyncpa [#allocation3], 1 }
0x1404   :  { %3158 = vsyncpa [#allocation3 + $0x1], 1 }

</bundles_post_ra>
